<compile_context>
chip_gen: v7x
topology: tpu7x:2x2x1
jax: 0.10.0
libtpu: 0.0.40
codegen_flags: <defaults>
</compile_context>

<pallas_src>
import functools
from typing import NamedTuple, Tuple

import jax
import jax.numpy as jnp
from jax.experimental import pallas as pl
from jax.experimental.pallas import tpu as pltpu


def _round_up(n, m):
    return (n + m - 1) // m * m


class VAEMeta(NamedTuple):
    """Static (hashable) layout metadata produced once by prepare_params."""
    input_dim: int
    latent_dim: int
    hidden: int
    offs: Tuple[int, int, int, int]   # 128-aligned lane offsets of w1/b1 .. w4/b4
    out_width: int                    # lane-padded output slab width


def _vae_kernel(x_ref, eps_ref, w_ref, bias_ref, out_ref, *, meta: VAEMeta):
    input_dim, latent_dim, hidden = meta.input_dim, meta.latent_dim, meta.hidden
    o1, o2, o3, o4 = meta.offs
    width = w_ref.shape[1]
    mxu_dtype = w_ref.dtype            # f32 or bf16; accumulation is always f32

    x = x_ref[...].astype(mxu_dtype)   # no-op when dtypes already match
    eps = eps_ref[...]                 # f32 noise
    # TODO(synk): eps could instead be drawn in-kernel via pltpu.prng_seed + prng_random_bits.

    # ----- encoder: Linear(input_dim, hidden) -> ReLU -----
    h = jnp.dot(x, w_ref[0:input_dim, o1:o1 + hidden],
                preferred_element_type=jnp.float32) + bias_ref[:, o1:o1 + hidden]
    h = jnp.maximum(h, 0.0)

    # ----- encoder: Linear(hidden, 2*latent) — 128-lane padded span (pad cols are zero) -----
    zml_p = jnp.dot(h.astype(mxu_dtype), w_ref[0:hidden, o2:o3],
                    preferred_element_type=jnp.float32) + bias_ref[:, o2:o3]
    mu = zml_p[:, 0:latent_dim]
    log_var = zml_p[:, latent_dim:2 * latent_dim]

    # ----- reparameterize: z = mu + eps * exp(0.5 * log_var)  (f32 VPU/EUP) -----
    z = mu + eps * jnp.exp(0.5 * log_var)

    # ----- decoder: Linear(latent, hidden) -> ReLU -----
    h2 = jnp.dot(z.astype(mxu_dtype), w_ref[0:latent_dim, o3:o3 + hidden],
                 preferred_element_type=jnp.float32) + bias_ref[:, o3:o3 + hidden]
    h2 = jnp.maximum(h2, 0.0)

    # ----- decoder: Linear(hidden, input_dim) — 128-lane padded span -----
    xhat_p = jnp.dot(h2.astype(mxu_dtype), w_ref[0:hidden, o4:width],
                     preferred_element_type=jnp.float32) + bias_ref[:, o4:width]
    x_hat = xhat_p[:, 0:input_dim]

    # ----- single lane-dense output slab: [x_hat | mu | log_var | zero pad] -----
    out_core = input_dim + 2 * latent_dim
    parts = [x_hat, zml_p[:, 0:2 * latent_dim]]
    pad = meta.out_width - out_core
    if pad:
        parts.append(jnp.zeros((x_hat.shape[0], pad), jnp.float32))
    out_ref[...] = jnp.concatenate(parts, axis=1)


def prepare_params(params, mxu_dtype=jnp.float32):
    """One-time packing of VAE weights/biases (hoisted out of the per-call hot path).

    Returns (weight_slab, bias_slab, meta):
      weight_slab: (max_in_features, width) in `mxu_dtype`, each layer's W at a
                   128-aligned lane offset, unused rows/cols zero.
      bias_slab:   (1, width) f32, same lane offsets as the weights.
    """
    w1, w2, w3, w4 = params["w1"], params["w2"], params["w3"], params["w4"]
    input_dim, hidden = w1.shape
    latent2 = w2.shape[1]
    latent_dim = latent2 // 2
    assert w3.shape == (latent_dim, hidden) and w4.shape == (hidden, input_dim)

    o1 = 0
    o2 = o1 + _round_up(hidden, 128)
    o3 = o2 + _round_up(latent2, 128)
    o4 = o3 + _round_up(hidden, 128)
    width = o4 + _round_up(input_dim, 128)
    rows = max(input_dim, hidden, latent_dim)

    wslab = jnp.zeros((rows, width), mxu_dtype)
    wslab = wslab.at[:input_dim, o1:o1 + hidden].set(w1.astype(mxu_dtype))
    wslab = wslab.at[:hidden, o2:o2 + latent2].set(w2.astype(mxu_dtype))
    wslab = wslab.at[:latent_dim, o3:o3 + hidden].set(w3.astype(mxu_dtype))
    wslab = wslab.at[:hidden, o4:o4 + input_dim].set(w4.astype(mxu_dtype))

    bias = jnp.zeros((1, width), jnp.float32)
    bias = bias.at[:, o1:o1 + hidden].set(params["b1"].reshape(1, hidden).astype(jnp.float32))
    bias = bias.at[:, o2:o2 + latent2].set(params["b2"].reshape(1, latent2).astype(jnp.float32))
    bias = bias.at[:, o3:o3 + hidden].set(params["b3"].reshape(1, hidden).astype(jnp.float32))
    bias = bias.at[:, o4:o4 + input_dim].set(params["b4"].reshape(1, input_dim).astype(jnp.float32))

    out_width = _round_up(input_dim + 2 * latent_dim, 128)
    meta = VAEMeta(input_dim, latent_dim, hidden, (o1, o2, o3, o4), out_width)
    return wslab, bias, meta


@functools.partial(jax.jit, static_argnames=("meta", "block_b"))
def vae_forward(x, eps, wslab, bias, meta, *, block_b=None):
    """x: (B, input_dim), eps: (B, latent_dim); wslab/bias/meta from prepare_params.

    Returns (x_hat, mu, log_var) in f32, matching the PyTorch VAE.forward semantics.
    block_b=None -> a single grid step (best on single-TC v5e/v6e and for small batches);
    pass a divisor of B (multiple of 8) only when the batch keeps M large per TensorCore.
    """
    B = x.shape[0]
    input_dim, latent_dim, hidden = meta.input_dim, meta.latent_dim, meta.hidden
    rows, width = wslab.shape
    out_width = meta.out_width

    if block_b is None or block_b >= B:
        block_b = B
    assert B % block_b == 0 and (block_b == B or block_b % 8 == 0)
    grid_b = B // block_b

    const = lambda i: (0, 0)   # weights/biases stay VMEM-resident across grid steps
    flops = 2 * B * (input_dim * hidden + hidden * 2 * latent_dim
                     + latent_dim * hidden + hidden * input_dim)
    bytes_accessed = (x.size * x.dtype.itemsize + eps.size * eps.dtype.itemsize
                      + wslab.size * wslab.dtype.itemsize + bias.size * 4
                      + B * out_width * 4)

    out = pl.pallas_call(
        functools.partial(_vae_kernel, meta=meta),
        out_shape=jax.ShapeDtypeStruct((B, out_width), jnp.float32),
        grid=(grid_b,),
        in_specs=[
            pl.BlockSpec((block_b, input_dim), lambda i: (i, 0)),    # x (full last dim)
            pl.BlockSpec((block_b, latent_dim), lambda i: (i, 0)),   # eps (full last dim)
            pl.BlockSpec((rows, width), const),                      # packed weights (resident)
            pl.BlockSpec((1, width), const),                         # packed biases (resident)
        ],
        out_specs=pl.BlockSpec((block_b, out_width), lambda i: (i, 0)),
        compiler_params=pltpu.CompilerParams(dimension_semantics=("parallel",)),
        cost_estimate=pl.CostEstimate(flops=flops,
                                      transcendentals=B * latent_dim,
                                      bytes_accessed=bytes_accessed),
    )(x, eps, wslab, bias)

    x_hat = out[:, :input_dim]
    mu = out[:, input_dim:input_dim + latent_dim]
    log_var = out[:, input_dim + latent_dim:input_dim + 2 * latent_dim]
    return x_hat, mu, log_var


def init_params(key, input_dim, latent_dim, hidden=256):
    """PyTorch-style Linear init: U(-1/sqrt(fan_in), 1/sqrt(fan_in)); weights as [in, out]."""
    def linear(k, fan_in, fan_out):
        kw, kb = jax.random.split(k)
        bound = 1.0 / jnp.sqrt(fan_in)
        w = jax.random.uniform(kw, (fan_in, fan_out), jnp.float32, -bound, bound)
        b = jax.random.uniform(kb, (1, fan_out), jnp.float32, -bound, bound)
        return w, b

    k1, k2, k3, k4 = jax.random.split(key, 4)
    w1, b1 = linear(k1, input_dim, hidden)        # encoder[0]
    w2, b2 = linear(k2, hidden, latent_dim * 2)   # encoder[2]
    w3, b3 = linear(k3, latent_dim, hidden)       # decoder[0]
    w4, b4 = linear(k4, hidden, input_dim)        # decoder[2]
    return dict(w1=w1, b1=b1, w2=w2, b2=b2, w3=w3, b3=b3, w4=w4, b4=b4)


def reference_forward(x, eps, p):
    """Pure-JAX reference identical to the PyTorch module's forward."""
    h = jnp.maximum(x @ p["w1"].astype(jnp.float32) + p["b1"], 0.0)
    zml = h @ p["w2"].astype(jnp.float32) + p["b2"]
    L = eps.shape[1]
    mu, log_var = zml[:, :L], zml[:, L:]
    z = mu + eps * jnp.exp(0.5 * log_var)
    h2 = jnp.maximum(z @ p["w3"].astype(jnp.float32) + p["b3"], 0.0)
    x_hat = h2 @ p["w4"].astype(jnp.float32) + p["b4"]
    return x_hat, mu, log_var


if __name__ == "__main__":
    # Effective batch 128 (per perf review; B=8 leaves the MXU <4% utilized).
    B, INPUT_DIM, LATENT_DIM = 128, 64, 16

    key = jax.random.PRNGKey(0)
    kx, keps, kparams = jax.random.split(key, 3)

    x = jax.random.normal(kx, (B, INPUT_DIM), jnp.float32)
    # torch.randn_like(std) in reparameterize -> deterministic eps supplied from host.
    eps = jax.random.normal(keps, (B, LATENT_DIM), jnp.float32)
    params = init_params(kparams, INPUT_DIM, LATENT_DIM)
    rx, rmu, rlv = reference_forward(x, eps, params)

    # --- f32 weights: exact semantics, tight check (single grid step) ---
    wslab, bias, meta = prepare_params(params, jnp.float32)   # one-time, outside hot path
    x_hat, mu, log_var = vae_forward(x, eps, wslab, bias, meta)
    jax.block_until_ready((x_hat, mu, log_var))
    assert jnp.allclose(x_hat, rx, atol=1e-5, rtol=1e-5)
    assert jnp.allclose(mu, rmu, atol=1e-5, rtol=1e-5)
    assert jnp.allclose(log_var, rlv, atol=1e-5, rtol=1e-5)

    # --- bf16 weights (v6e/v7x MXU fast path), f32 accumulation: relaxed tolerance.
    # Note: activations are cast to bf16 at the MXU boundary, which is a different numerical
    # contract than the f32 reference; keep f32 weights if bitwise parity matters.
    wslab_bf, bias_bf, meta_bf = prepare_params(params, jnp.bfloat16)
    xb, mb, lb = vae_forward(x, eps, wslab_bf, bias_bf, meta_bf)
    jax.block_until_ready((xb, mb, lb))
    assert jnp.allclose(xb, rx, atol=1e-1, rtol=1e-1)
    assert jnp.allclose(mb, rmu, atol=1e-1, rtol=1e-1)
    assert jnp.allclose(lb, rlv, atol=1e-1, rtol=1e-1)

    print("KERNEL_OK")
</pallas_src>

<mosaic_0001>
module attributes {stable_mosaic.version = 11 : i64} {
  func.func @_vae_kernel(%arg0: i32, %arg1: memref<128x64xf32, #tpu.memory_space<vmem>>, %arg2: memref<128x16xf32, #tpu.memory_space<vmem>>, %arg3: memref<256x768xf32, #tpu.memory_space<vmem>>, %arg4: memref<1x768xf32, #tpu.memory_space<vmem>>, %arg5: memref<128x128xf32, #tpu.memory_space<vmem>>) attributes {dimension_semantics = [#tpu.dimension_semantics<parallel>], iteration_bounds = array<i64: 1>, scalar_prefetch = 0 : i64, scratch_operands = 0 : i64, tpu.core_type = #tpu.core_type<tc>, window_params = [{transform_indices = @transform_0, window_bounds = array<i64: 128, 64>}, {transform_indices = @transform_1, window_bounds = array<i64: 128, 16>}, {pipeline_mode = #tpu.pipeline_mode<synchronous>, transform_indices = @transform_2, window_bounds = array<i64: 256, 768>}, {pipeline_mode = #tpu.pipeline_mode<synchronous>, transform_indices = @transform_3, window_bounds = array<i64: 1, 768>}, {transform_indices = @transform_4, window_bounds = array<i64: 128, 128>}]} {
    %c0 = arith.constant 0 : index
    %c0_0 = arith.constant 0 : index
    %0 = vector.load %arg1[%c0, %c0_0] : memref<128x64xf32, #tpu.memory_space<vmem>>, vector<128x64xf32>
    %c0_1 = arith.constant 0 : index
    %c0_2 = arith.constant 0 : index
    %1 = vector.load %arg2[%c0_1, %c0_2] : memref<128x16xf32, #tpu.memory_space<vmem>>, vector<128x16xf32>
    %c0_3 = arith.constant 0 : index
    %c0_4 = arith.constant 0 : index
    %2 = vector.load %arg3[%c0_3, %c0_4] : memref<256x768xf32, #tpu.memory_space<vmem>>, vector<64x256xf32>
    %cst = arith.constant dense<0.000000e+00> : vector<128x256xf32>
    %3 = tpu.matmul %0, %2, %cst {dimension_numbers = #tpu.dot_dimension_numbers<[1], [0], [0], [1], [0, 0, 1, 1], [], []>} : vector<128x64xf32>, vector<64x256xf32>, vector<128x256xf32> -> vector<128x256xf32>
    %c0_5 = arith.constant 0 : index
    %c0_6 = arith.constant 0 : index
    %4 = vector.load %arg4[%c0_5, %c0_6] : memref<1x768xf32, #tpu.memory_space<vmem>>, vector<1x256xf32>
    %5 = vector.broadcast %4 : vector<1x256xf32> to vector<128x256xf32>
    %6 = arith.addf %3, %5 : vector<128x256xf32>
    %cst_7 = arith.constant 0.000000e+00 : f32
    %7 = vector.broadcast %cst_7 : f32 to vector<128x256xf32>
    %8 = arith.maximumf %6, %7 : vector<128x256xf32>
    %c0_8 = arith.constant 0 : index
    %c256 = arith.constant 256 : index
    %9 = vector.load %arg3[%c0_8, %c256] : memref<256x768xf32, #tpu.memory_space<vmem>>, vector<256x128xf32>
    %cst_9 = arith.constant dense<0.000000e+00> : vector<128x128xf32>
    %10 = tpu.matmul %8, %9, %cst_9 {dimension_numbers = #tpu.dot_dimension_numbers<[1], [0], [0], [1], [0, 0, 1, 1], [], []>} : vector<128x256xf32>, vector<256x128xf32>, vector<128x128xf32> -> vector<128x128xf32>
    %c0_10 = arith.constant 0 : index
    %c256_11 = arith.constant 256 : index
    %11 = vector.load %arg4[%c0_10, %c256_11] : memref<1x768xf32, #tpu.memory_space<vmem>>, vector<1x128xf32>
    %12 = vector.broadcast %11 : vector<1x128xf32> to vector<128x128xf32>
    %13 = arith.addf %10, %12 : vector<128x128xf32>
    %14 = vector.extract_strided_slice %13 {offsets = [0, 0], sizes = [128, 16], strides = [1, 1]} : vector<128x128xf32> to vector<128x16xf32>
    %15 = vector.extract_strided_slice %13 {offsets = [0, 16], sizes = [128, 16], strides = [1, 1]} : vector<128x128xf32> to vector<128x16xf32>
    %cst_12 = arith.constant 5.000000e-01 : f32
    %16 = vector.broadcast %cst_12 : f32 to vector<128x16xf32>
    %17 = arith.mulf %16, %15 : vector<128x16xf32>
    %18 = math.exp %17 : vector<128x16xf32>
    %19 = arith.mulf %1, %18 : vector<128x16xf32>
    %20 = arith.addf %14, %19 : vector<128x16xf32>
    %c0_13 = arith.constant 0 : index
    %c384 = arith.constant 384 : index
    %21 = vector.load %arg3[%c0_13, %c384] : memref<256x768xf32, #tpu.memory_space<vmem>>, vector<16x256xf32>
    %cst_14 = arith.constant dense<0.000000e+00> : vector<128x256xf32>
    %22 = tpu.matmul %20, %21, %cst_14 {dimension_numbers = #tpu.dot_dimension_numbers<[1], [0], [0], [1], [0, 0, 1, 1], [], []>} : vector<128x16xf32>, vector<16x256xf32>, vector<128x256xf32> -> vector<128x256xf32>
    %c0_15 = arith.constant 0 : index
    %c384_16 = arith.constant 384 : index
    %23 = vector.load %arg4[%c0_15, %c384_16] : memref<1x768xf32, #tpu.memory_space<vmem>>, vector<1x256xf32>
    %24 = vector.broadcast %23 : vector<1x256xf32> to vector<128x256xf32>
    %25 = arith.addf %22, %24 : vector<128x256xf32>
    %cst_17 = arith.constant 0.000000e+00 : f32
    %26 = vector.broadcast %cst_17 : f32 to vector<128x256xf32>
    %27 = arith.maximumf %25, %26 : vector<128x256xf32>
    %c0_18 = arith.constant 0 : index
    %c640 = arith.constant 640 : index
    %28 = vector.load %arg3[%c0_18, %c640] : memref<256x768xf32, #tpu.memory_space<vmem>>, vector<256x128xf32>
    %cst_19 = arith.constant dense<0.000000e+00> : vector<128x128xf32>
    %29 = tpu.matmul %27, %28, %cst_19 {dimension_numbers = #tpu.dot_dimension_numbers<[1], [0], [0], [1], [0, 0, 1, 1], [], []>} : vector<128x256xf32>, vector<256x128xf32>, vector<128x128xf32> -> vector<128x128xf32>
    %c0_20 = arith.constant 0 : index
    %c640_21 = arith.constant 640 : index
    %30 = vector.load %arg4[%c0_20, %c640_21] : memref<1x768xf32, #tpu.memory_space<vmem>>, vector<1x128xf32>
    %31 = vector.broadcast %30 : vector<1x128xf32> to vector<128x128xf32>
    %32 = arith.addf %29, %31 : vector<128x128xf32>
    %33 = vector.extract_strided_slice %32 {offsets = [0, 0], sizes = [128, 64], strides = [1, 1]} : vector<128x128xf32> to vector<128x64xf32>
    %34 = vector.extract_strided_slice %13 {offsets = [0, 0], sizes = [128, 32], strides = [1, 1]} : vector<128x128xf32> to vector<128x32xf32>
    %cst_22 = arith.constant 0.000000e+00 : f32
    %35 = vector.broadcast %cst_22 : f32 to vector<128x32xf32>
    %36 = tpu.concatenate %33, %34, %35 in 1 : vector<128x64xf32>, vector<128x32xf32>, vector<128x32xf32> -> vector<128x128xf32>
    %c0_23 = arith.constant 0 : index
    %c0_24 = arith.constant 0 : index
    %37 = vector.load %arg5[%c0_23, %c0_24] : memref<128x128xf32, #tpu.memory_space<vmem>>, vector<128x128xf32>
    tpu.vector_store %arg5[%c0_23, %c0_24], %36 {strides = array<i32>} : memref<128x128xf32, #tpu.memory_space<vmem>>, vector<128x128xf32>,
    return
  }
  func.func @transform_0(%arg0: i32) -> (i32, i32) {
    %c0_i32 = arith.constant 0 : i32
    %c0_i32_0 = arith.constant 0 : i32
    return %arg0, %c0_i32 : i32, i32
  }
  func.func @transform_1(%arg0: i32) -> (i32, i32) {
    %c0_i32 = arith.constant 0 : i32
    %c0_i32_0 = arith.constant 0 : i32
    return %arg0, %c0_i32 : i32, i32
  }
  func.func @transform_2(%arg0: i32) -> (i32, i32) {
    %c0_i32 = arith.constant 0 : i32
    %c0_i32_0 = arith.constant 0 : i32
    %c0_i32_1 = arith.constant 0 : i32
    return %c0_i32, %c0_i32_0 : i32, i32
  }
  func.func @transform_3(%arg0: i32) -> (i32, i32) {
    %c0_i32 = arith.constant 0 : i32
    %c0_i32_0 = arith.constant 0 : i32
    %c0_i32_1 = arith.constant 0 : i32
    return %c0_i32, %c0_i32_0 : i32, i32
  }
  func.func @transform_4(%arg0: i32) -> (i32, i32) {
    %c0_i32 = arith.constant 0 : i32
    %c0_i32_0 = arith.constant 0 : i32
    return %arg0, %c0_i32 : i32, i32
  }
}

</mosaic_0001>

<bundles_post_ra>
// kernel: vae_forward.1
= control target key start
LH: loop header
LB: loop body
LE: loop exit
PB: predicated region body
PF: predicated region fallthrough
CT: control target
= control target key end

     0   :  { %9 = vsyncpa [#allocation3], 0  ;;  %s1577_s15 = smov [#allocation2]   ;;  %s2104_s0 = inlined_call_operand.vmem [shape: f32[128,64], index: 0, kind: input, shape index: {}]   ;;  %s2105_s1 = inlined_call_operand.vmem [shape: f32[128,16], index: 1, kind: input, shape index: {}]   ;;  %s2106_s2 = inlined_call_operand.hbm [shape: f32[256,768], index: 2, kind: input, shape index: {}]   ;;  %s2107_s3 = inlined_call_operand.vmem [shape: f32[1,768], index: 3, kind: input, shape index: {}]   ;;  %s2108_s4 = inlined_call_operand.vmem [shape: f32[128,128], index: 4, kind: output, shape index: {}]  }
   0x1   :  { %s19_s16 = sshll.u32 %s1577_s15, 4  ;;  %s1553_s19 = scalar_lea.hbm %s2106_s2, 24576  ;;  %s20_s16 = int_to_ptr.vmem [resolvable:$true] %s19_s16 }
   0x2   :  { %p1554_p0 = scmp.ne.s32.totalorder %s2106_s2, %s1553_s19  ;;  %p1557_p1 = scmp.lt.u32.totalorder %s1553_s19, %s2106_s2 }
   0x4   :  { %p1559_p2 = pnand %p1557_p1, %p1554_p0 }
   0x6   :  { %1562 = shalt.err (!%p1559_p2)
}
   0x7   :  { %s1563_s24 = scalar_lea.vmem %s20_s16, 24576  ;;  %p1568_p4 = scmp.lt.s32.totalorder %s20_s16, %s20_s16 }
   0x8   :  { %p1564_p3 = scmp.ne.s32.totalorder %s20_s16, %s1563_s24  ;;  %p1569_p5 = scmp.lt.s32.totalorder %s1563_s24, %s1563_s24 }
   0xa   :  { %p1570_p6 = por %p1569_p5, %p1568_p4 }
   0xc   :  { %p1571_p7 = pnand %p1570_p6, %p1564_p3 }
   0xe   :  { %1574 = shalt.err (!%p1571_p7)
}
   0xf   :  { %s1578_s25 = smov 768   ;;  %s1579_s26 = smov 48  }
  0x10   :  { %25 = dma.hbm_to_vmem [thread:$0]  %s2106_s2, 24576, %s20_s16, [#allocation3], %s1578_s25, %s1578_s25, %s1579_s26  }
  0x11   :  { %1575 = dma.done.wait [#allocation3], 24576  }
  0x12   :  { %1576 = vsyncadd [#allocation3], 4294942720  ;;  %v1580_v0 = vmov 0.0   ;;  %v64_v1 = vld [vmem:[#allocation2 + $0x8] sm:$0xff]  ;;  %v66_v2 = vld [vmem:[#allocation2 + $0x38] sm:$0xff]  ;;  %vm91_vm0 = vcmask 523264  }
  0x13   :  { %204 = vmatprep.mubr.f32.mxu0 %v1580_v0  ;;  %v63_v3 = vld [vmem:[#allocation2] sm:$0xff]  ;;  %v1415_v4 = vpack.c.bf16 %v66_v2, %v64_v1  ;;  %v65_v5 = vld [vmem:[#allocation2 + $0x30] sm:$0xff]  ;;  %v68_v6 = vld [vmem:[#allocation2 + $0x68] sm:$0xff]  ;;  %s1581_s10 = smov 112   ;;  %s1582_s11 = smov 64   ;;  %vm677_vm1 = vcmask 130048  }
  0x14   :  { %v70_v7 = vld [vmem:[#allocation2 + $0x98] sm:$0xff]  ;;  %v1417_v8 = vpack.c.bf16 %v65_v5, %v63_v3  ;;  %v67_v10 = vld [vmem:[#allocation2 + $0x60] sm:$0xff]  ;;  %v69_v11 = vld [vmem:[#allocation2 + $0x90] sm:$0xff]  ;;  %vm1183_vm2 = vcmask 785408  }
  0x15   :  { %v1419_v9 = vpack.c.bf16 %v70_v7, %v68_v6  ;;  %v72_v12 = vld [vmem:[#allocation2 + $0xc8] sm:$0xff]  ;;  %1416 = vmatprep.subr.bf16.mxu0 %v1415_v4  ;;  %v74_v13 = vld [vmem:[#allocation2 + $0xf8] sm:$0xff]  ;;  %v1421_v14 = vpack.c.bf16 %v69_v11, %v67_v10  ;;  %v71_v16 = vld [vmem:[#allocation2 + $0xc0] sm:$0xff] }
  0x16   :  { %1418 = vmatpush1.bf16.msra.mxu0 %v1417_v8  ;;  %v1423_v15 = vpack.c.bf16 %v74_v13, %v72_v12  ;;  %v73_v17 = vld [vmem:[#allocation2 + $0xf0] sm:$0xff]  ;;  %v76_v18 = vld [vmem:[#allocation2 + $0x128] sm:$0xff]  ;;  %v78_v19 = vld [vmem:[#allocation2 + $0x158] sm:$0xff] }
  0x17   :  { %1420 = vmatprep.subr.bf16.mxu0 %v1419_v9  ;;  %v1425_v20 = vpack.c.bf16 %v73_v17, %v71_v16  ;;  %v1427_v21 = vpack.c.bf16 %v78_v19, %v76_v18  ;;  %v75_v22 = vld [vmem:[#allocation2 + $0x120] sm:$0xff]  ;;  %v77_v23 = vld [vmem:[#allocation2 + $0x150] sm:$0xff]  ;;  %v32_v43 = vld [vmem:[%s2104_s0 + $0x8] sm:$0xff] }
  0x18   :  { %v349_v24 = vld [vmem:[#allocation2 + $0x310] sm:$0xff]  ;;  %v350_v25 = vld [vmem:[#allocation2 + $0x340] sm:$0xff]  ;;  %v1429_v28 = vpack.c.bf16 %v77_v23, %v75_v22  ;;  %v34_v57 = vld [vmem:[%s2104_s0 + $0x18] sm:$0xff] }
  0x19   :  { %v333_v26 = vld [vmem:[#allocation2 + $0x10] sm:$0xff]  ;;  %v334_v27 = vld [vmem:[#allocation2 + $0x40] sm:$0xff]  ;;  %v1431_v29 = vpack.c.bf16 %v350_v25, %v349_v24  ;;  %v36_v8 = vld [vmem:[%s2104_s0 + $0x28] sm:$0xff] }
  0x1a   :  { %1422 = vmatpush1.bf16.msra.mxu0 %v1421_v14  ;;  %v351_v30 = vld [vmem:[#allocation2 + $0x370] sm:$0xff]  ;;  %v352_v31 = vld [vmem:[#allocation2 + $0x3a0] sm:$0xff]  ;;  %v1433_v32 = vpack.c.bf16 %v334_v27, %v333_v26  ;;  %v38_v17 = vld [vmem:[%s2104_s0 + $0x38] sm:$0xff]  ;;  %v81_v26 = vlaneseq }
  0x1b   :  { %1424 = vmatprep.subr.bf16.mxu0 %v1423_v15  ;;  %v1435_v33 = vpack.c.bf16 %v352_v31, %v351_v30  ;;  %v335_v34 = vld [vmem:[#allocation2 + $0x70] sm:$0xff]  ;;  %v336_v35 = vld [vmem:[#allocation2 + $0xa0] sm:$0xff]  ;;  %1499 = vmatprep.subr.bf16.mxu1 %v1431_v29  ;;  %v40_v19 = vld [vmem:[%s2104_s0 + $0x48] sm:$0xff] }
  0x1c   :  { %1507 = vmatpush3.bf16.msra.mxu1 %v1433_v32  ;;  %v31_v36 = vld [vmem:[%s2104_s0] sm:$0xff]  ;;  %v353_v37 = vld [vmem:[#allocation2 + $0x3d0] sm:$0xff]  ;;  %v1437_v39 = vpack.c.bf16 %v336_v35, %v335_v34  ;;  %v44_v23 = vld [vmem:[%s2104_s0 + $0x68] sm:$0xff]  ;;  %v1700_v27 = vshrl.u32 %v81_v26, 7 }
  0x1d   :  { %v354_v38 = vld [vmem:[#allocation2 + $0x400] sm:$0xff]  ;;  %1500 = vmatprep.subr.bf16.mxu1 %v1435_v33  ;;  %v337_v40 = vld [vmem:[#allocation2 + $0xd0] sm:$0xff]  ;;  %v46_v25 = vld [vmem:[%s2104_s0 + $0x78] sm:$0xff] }
  0x1e   :  { %1426 = vmatpush1.bf16.msra.mxu0 %v1425_v20  ;;  %v338_v41 = vld [vmem:[#allocation2 + $0x100] sm:$0xff]  ;;  %v1439_v42 = vpack.c.bf16 %v354_v38, %v353_v37  ;;  %v355_v44 = vld [vmem:[#allocation2 + $0x430] sm:$0xff]  ;;  %v87_v30 = vsub.s32 1, %v1700_v27 }
  0x1f   :  { %1428 = vmatprep.subr.bf16.mxu0 %v1427_v21  ;;  %v356_v45 = vld [vmem:[#allocation2 + $0x460] sm:$0xff]  ;;  %v1441_v46 = vpack.c.bf16 %v338_v41, %v337_v40  ;;  %v339_v47 = vld [vmem:[#allocation2 + $0x130] sm:$0xff]  ;;  %v42_v21 = vld [vmem:[%s2104_s0 + $0x58] sm:$0xff] }
  0x20   :  { %1508 = vmatpush3.bf16.msra.mxu1 %v1437_v39  ;;  %v340_v48 = vld [vmem:[#allocation2 + $0x160] sm:$0xff]  ;;  %v1443_v49 = vpack.c.bf16 %v356_v45, %v355_v44  ;;  %v33_v50 = vld [vmem:[%s2104_s0 + $0x10] sm:$0xff] }
  0x21   :  { %1501 = vmatprep.subr.bf16.mxu1 %v1439_v42  ;;  %v357_v51 = vld [vmem:[#allocation2 + $0x490] sm:$0xff]  ;;  %v358_v52 = vld [vmem:[#allocation2 + $0x4c0] sm:$0xff]  ;;  %v1445_v53 = vpack.c.bf16 %v340_v48, %v339_v47 }
  0x22   :  { %1430 = vmatpush1.bf16.msra.mxu0 %v1429_v28  ;;  %v341_v54 = vld [vmem:[#allocation2 + $0x190] sm:$0xff]  ;;  %v342_v55 = vld [vmem:[#allocation2 + $0x1c0] sm:$0xff]  ;;  %v1447_v56 = vpack.c.bf16 %v358_v52, %v357_v51  ;;  %v83_v28 = vsub.s32 0, %v1700_v27 }
  0x23   :  { %1432 = vmatprep.subr.bf16.mxu0 %v1431_v29  ;;  %v359_v58 = vld [vmem:[#allocation2 + $0x4f0] sm:$0xff]  ;;  %v360_v59 = vld [vmem:[#allocation2 + $0x520] sm:$0xff]  ;;  %v1449_v60 = vpack.c.bf16 %v342_v55, %v341_v54 }
  0x24   :  { %1509 = vmatpush3.bf16.msra.mxu1 %v1441_v46  ;;  %v343_v61 = vld [vmem:[#allocation2 + $0x1f0] sm:$0xff]  ;;  %v344_v62 = vld [vmem:[#allocation2 + $0x220] sm:$0xff]  ;;  %v1451_v63 = vpack.c.bf16 %v360_v59, %v359_v58 }
  0x25   :  { %1221 = vmatmul.mubr.msk.f32.vlgmr.msra.gmra.mrb[0].mxu0 %vm91_vm0, %v31_v36  ;;  %1502 = vmatprep.subr.bf16.mxu1 %v1443_v49  ;;  %v35_v1 = vld [vmem:[%s2104_s0 + $0x20] sm:$0xff]  ;;  %v361_v2 = vld [vmem:[#allocation2 + $0x550] sm:$0xff]  ;;  %v1453_v4 = vpack.c.bf16 %v344_v62, %v343_v61 }
  0x26   :  { %210 = vmatprep.mubr.f32.mxu0 %v1580_v0  ;;  %1434 = vmatpush3.bf16.msra.mxu0 %v1433_v32  ;;  %v362_v3 = vld [vmem:[#allocation2 + $0x580] sm:$0xff]  ;;  %v345_v5 = vld [vmem:[#allocation2 + $0x250] sm:$0xff] }
  0x27   :  { %1436 = vmatprep.subr.bf16.mxu0 %v1435_v33  ;;  %v346_v6 = vld [vmem:[#allocation2 + $0x280] sm:$0xff]  ;;  %v1455_v7 = vpack.c.bf16 %v362_v3, %v361_v2  ;;  %v363_v9 = vld [vmem:[#allocation2 + $0x5b0] sm:$0xff] }
  0x28   :  { %1510 = vmatpush3.bf16.msra.mxu1 %v1445_v53  ;;  %v364_v10 = vld [vmem:[#allocation2 + $0x5e0] sm:$0xff]  ;;  %v1457_v11 = vpack.c.bf16 %v346_v6, %v345_v5  ;;  %v347_v12 = vld [vmem:[#allocation2 + $0x2b0] sm:$0xff] }
  0x29   :  { %1222 = vmatmul.mubr.msk.f32.gmra.mrb[2].mxu0 %vm91_vm0, %v32_v43  ;;  %1503 = vmatprep.subr.bf16.mxu1 %v1447_v56  ;;  %v348_v13 = vld [vmem:[#allocation2 + $0x2e0] sm:$0xff]  ;;  %v1459_v14 = vpack.c.bf16 %v364_v10, %v363_v9  ;;  %v37_v15 = vld [vmem:[%s2104_s0 + $0x30] sm:$0xff] }
  0x2a   :  { %216 = vmatprep.mubr.f32.mxu0 %v1580_v0  ;;  %1438 = vmatpush3.bf16.msra.mxu0 %v1437_v39  ;;  %v1461_v16 = vpack.c.bf16 %v348_v13, %v347_v12  ;;  %v39_v18 = vld [vmem:[%s2104_s0 + $0x40] sm:$0xff]  ;;  %v41_v20 = vld [vmem:[%s2104_s0 + $0x50] sm:$0xff] }
  0x2b   :  { %1440 = vmatprep.subr.bf16.mxu0 %v1439_v42  ;;  %v43_v22 = vld [vmem:[%s2104_s0 + $0x60] sm:$0xff]  ;;  %v45_v24 = vld [vmem:[%s2104_s0 + $0x70] sm:$0xff] }
  0x2c   :  { %1511 = vmatpush3.bf16.msra.mxu1 %v1449_v60  ;;  %v79_v29 = vld [vmem:[%s2107_s3] sm:$0x3] }
  0x2d   :  { %1223 = vmatmul.mubr.msk.f32.gmra.mrb[4].mxu0 %vm91_vm0, %v33_v50  ;;  %1504 = vmatprep.subr.bf16.mxu1 %v1451_v63  ;;  %v1709_v31 = vrot.slane %v79_v29, %v83_v28  ;;  %v1713_v32 = vrot.slane %v79_v29, %v87_v30 }
  0x2e   :  { %222 = vmatprep.mubr.f32.mxu0 %v1580_v0  ;;  %1442 = vmatpush3.bf16.msra.mxu0 %v1441_v46 }
  0x2f   :  { %1444 = vmatprep.subr.bf16.mxu0 %v1443_v49 }
  0x30   :  { %1512 = vmatpush3.bf16.msra.mxu1 %v1453_v4 }
  0x31   :  { %1224 = vmatmul.mubr.msk.f32.gmra.mrb[6].mxu0 %vm91_vm0, %v34_v57  ;;  %1505 = vmatprep.subr.bf16.mxu1 %v1455_v7 }
  0x32   :  { %228 = vmatprep.mubr.f32.mxu0 %v1580_v0  ;;  %1446 = vmatpush3.bf16.msra.mxu0 %v1445_v53 }
  0x33   :  { %1448 = vmatprep.subr.bf16.mxu0 %v1447_v56 }
  0x34   :  { %1513 = vmatpush3.bf16.msra.mxu1 %v1457_v11 }
  0x35   :  { %1225 = vmatmul.mubr.msk.f32.gmra.mrb[8].mxu0 %vm91_vm0, %v35_v1  ;;  %1506 = vmatprep.subr.bf16.mxu1 %v1459_v14 }
  0x36   :  { %234 = vmatprep.mubr.f32.mxu0 %v1580_v0  ;;  %1450 = vmatpush3.bf16.msra.mxu0 %v1449_v60 }
  0x37   :  { %1452 = vmatprep.subr.bf16.mxu0 %v1451_v63 }
  0x38   :  { %1514 = vmatpush3.bf16.msra.mxu1 %v1461_v16 }
  0x39   :  { %1226 = vmatmul.mubr.msk.f32.gmra.mrb[10].mxu0 %vm91_vm0, %v36_v8 }
  0x3a   :  { %240 = vmatprep.mubr.f32.mxu0 %v1580_v0  ;;  %1454 = vmatpush3.bf16.msra.mxu0 %v1453_v4 }
  0x3b   :  { %1456 = vmatprep.subr.bf16.mxu0 %v1455_v7 }
  0x3d   :  { %1227 = vmatmul.mubr.msk.f32.gmra.mrb[12].mxu0 %vm91_vm0, %v37_v15 }
  0x3e   :  { %246 = vmatprep.mubr.f32.mxu0 %v1580_v0  ;;  %1458 = vmatpush3.bf16.msra.mxu0 %v1457_v11 }
  0x3f   :  { %1460 = vmatprep.subr.bf16.mxu0 %v1459_v14 }
  0x41   :  { %1228 = vmatmul.mubr.msk.f32.gmra.mrb[14].mxu0 %vm91_vm0, %v38_v17 }
  0x42   :  { %252 = vmatprep.mubr.f32.mxu0 %v1580_v0  ;;  %1462 = vmatpush3.bf16.msra.mxu0 %v1461_v16 }
  0x45   :  { %1229 = vmatmul.mubr.msk.f32.gmra.mrb[16].mxu0 %vm91_vm0, %v39_v18 }
  0x46   :  { %258 = vmatprep.mubr.f32.mxu0 %v1580_v0 }
  0x49   :  { %1230 = vmatmul.mubr.msk.f32.gmra.mrb[18].mxu0 %vm91_vm0, %v40_v19 }
  0x4a   :  { %264 = vmatprep.mubr.f32.mxu0 %v1580_v0 }
  0x4d   :  { %1231 = vmatmul.mubr.msk.f32.gmra.mrb[20].mxu0 %vm91_vm0, %v41_v20 }
  0x4e   :  { %270 = vmatprep.mubr.f32.mxu0 %v1580_v0 }
  0x51   :  { %1232 = vmatmul.mubr.msk.f32.gmra.mrb[22].mxu0 %vm91_vm0, %v42_v21 }
  0x52   :  { %276 = vmatprep.mubr.f32.mxu0 %v1580_v0 }
  0x55   :  { %1233 = vmatmul.mubr.msk.f32.gmra.mrb[24].mxu0 %vm91_vm0, %v43_v22 }
  0x56   :  { %282 = vmatprep.mubr.f32.mxu0 %v1580_v0 }
  0x59   :  { %1234 = vmatmul.mubr.msk.f32.gmra.mrb[26].mxu0 %vm91_vm0, %v44_v23 }
  0x5a   :  { %288 = vmatprep.mubr.f32.mxu0 %v1580_v0 }
  0x5d   :  { %1235 = vmatmul.mubr.msk.f32.gmra.mrb[28].mxu0 %vm91_vm0, %v45_v24 }
  0x5e   :  { %294 = vmatprep.mubr.f32.mxu0 %v1580_v0 }
  0x61   :  { %1236 = vmatmul.mubr.msk.f32.gmra.mrb[30].mxu0 %vm91_vm0, %v46_v25 }
  0xf8   :  { %v206_v33 = vpop.f32.mrb[0].mxu0 }
  0xf9   :  { %v207_v34 = vadd.f32 %v206_v33, %v1709_v31  ;;  %v208_v35 = vpop.f32.mrb[1].mxu0 }
  0xfa   :  { %v209_v36 = vadd.f32 %v208_v35, %v1713_v32 }
  0xfb   :  { %v301_v39 = vmax.f32 %v207_v34, 0.0 }
  0xfc   :  { %v302_v37 = vmax.f32 %v209_v36, 0.0  ;;  %v212_v38 = vpop.f32.mrb[2].mxu0 }
  0xfd   :  { %v213_v40 = vadd.f32 %v212_v38, %v1709_v31  ;;  %v214_v41 = vpop.f32.mrb[3].mxu0 }
  0xfe   :  { %v215_v42 = vadd.f32 %v214_v41, %v1713_v32  ;;  %436 = vmatprep.mubr.f32.mxu0 %v302_v37 }
  0xff   :  { %437 = vmatmul.mubr.f32.vlgmr.msra.gmra.mrb[32].mxu0 %v301_v39  ;;  %v303_v45 = vmax.f32 %v213_v40, 0.0 }
 0x100   :  { %v304_v43 = vmax.f32 %v215_v42, 0.0  ;;  %v218_v44 = vpop.f32.mrb[4].mxu0 }
 0x101   :  { %v219_v46 = vadd.f32 %v218_v44, %v1709_v31  ;;  %v220_v47 = vpop.f32.mrb[5].mxu0 }
 0x102   :  { %441 = vmatprep.mubr.f32.mxu0 %v304_v43  ;;  %v221_v48 = vadd.f32 %v220_v47, %v1713_v32 }
 0x103   :  { %442 = vmatmul.mubr.f32.gmra.mrb[34].mxu0 %v303_v45  ;;  %v305_v51 = vmax.f32 %v219_v46, 0.0 }
 0x104   :  { %v224_v49 = vpop.f32.mrb[6].mxu0  ;;  %v306_v50 = vmax.f32 %v221_v48, 0.0  ;;  %790 = vmatprep.mubr.f32.mxu0 %v1580_v0 }
 0x105   :  { %v225_v52 = vadd.f32 %v224_v49, %v1709_v31  ;;  %v226_v53 = vpop.f32.mrb[7].mxu0 }
 0x106   :  { %v227_v54 = vadd.f32 %v226_v53, %v1713_v32  ;;  %446 = vmatprep.mubr.f32.mxu1 %v306_v50 }
 0x107   :  { %447 = vmatmul.mubr.f32.vlgmr.msra.gmra.mrb[0].mxu1 %v305_v51  ;;  %v307_v57 = vmax.f32 %v225_v52, 0.0 }
 0x108   :  { %v308_v55 = vmax.f32 %v227_v54, 0.0  ;;  %v230_v56 = vpop.f32.mrb[8].mxu0 }
 0x109   :  { %v231_v58 = vadd.f32 %v230_v56, %v1709_v31  ;;  %v232_v59 = vpop.f32.mrb[9].mxu0 }
 0x10a   :  { %v233_v60 = vadd.f32 %v232_v59, %v1713_v32  ;;  %451 = vmatprep.mubr.f32.mxu1 %v308_v55 }
 0x10b   :  { %452 = vmatmul.mubr.f32.gmra.mrb[2].mxu1 %v307_v57  ;;  %v309_v63 = vmax.f32 %v231_v58, 0.0 }
 0x10c   :  { %v310_v61 = vmax.f32 %v233_v60, 0.0  ;;  %v236_v62 = vpop.f32.mrb[10].mxu0 }
 0x10d   :  { %v237_v1 = vadd.f32 %v236_v62, %v1709_v31  ;;  %v238_v2 = vpop.f32.mrb[11].mxu0 }
 0x10e   :  { %v239_v3 = vadd.f32 %v238_v2, %v1713_v32  ;;  %456 = vmatprep.mubr.f32.mxu1 %v310_v61 }
 0x10f   :  { %457 = vmatmul.mubr.f32.gmra.mrb[4].mxu1 %v309_v63  ;;  %v311_v6 = vmax.f32 %v237_v1, 0.0 }
 0x110   :  { %v312_v4 = vmax.f32 %v239_v3, 0.0  ;;  %v242_v5 = vpop.f32.mrb[12].mxu0 }
 0x111   :  { %v243_v7 = vadd.f32 %v242_v5, %v1709_v31  ;;  %v244_v8 = vpop.f32.mrb[13].mxu0 }
 0x112   :  { %v245_v9 = vadd.f32 %v244_v8, %v1713_v32  ;;  %461 = vmatprep.mubr.f32.mxu1 %v312_v4  ;;  %v662_v8 = vld [vmem:[#allocation2 + $0x20] sm:$0xff] }
 0x113   :  { %462 = vmatmul.mubr.f32.gmra.mrb[6].mxu1 %v311_v6  ;;  %v313_v12 = vmax.f32 %v243_v7, 0.0 }
 0x114   :  { %v314_v10 = vmax.f32 %v245_v9, 0.0  ;;  %v248_v11 = vpop.f32.mrb[14].mxu0  ;;  %v664_v9 = vld [vmem:[#allocation2 + $0x50] sm:$0xff] }
 0x115   :  { %v249_v13 = vadd.f32 %v248_v11, %v1709_v31  ;;  %v250_v14 = vpop.f32.mrb[15].mxu0  ;;  %v1463_v11 = vpack.c.bf16 %v664_v9, %v662_v8 }
 0x116   :  { %v251_v15 = vadd.f32 %v250_v14, %v1713_v32  ;;  %466 = vmatprep.mubr.f32.mxu1 %v314_v10  ;;  %v661_v10 = vld [vmem:[#allocation2 + $0x18] sm:$0xff] }
 0x117   :  { %467 = vmatmul.mubr.f32.gmra.mrb[8].mxu1 %v313_v12  ;;  %v315_v18 = vmax.f32 %v249_v13, 0.0  ;;  %v663_v12 = vld [vmem:[#allocation2 + $0x48] sm:$0xff]  ;;  %1464 = vmatprep.subr.bf16.mxu0 %v1463_v11 }
 0x118   :  { %v316_v16 = vmax.f32 %v251_v15, 0.0  ;;  %v254_v17 = vpop.f32.mrb[16].mxu0  ;;  %v1465_v13 = vpack.c.bf16 %v663_v12, %v661_v10 }
 0x119   :  { %v255_v19 = vadd.f32 %v254_v17, %v1709_v31  ;;  %v256_v20 = vpop.f32.mrb[17].mxu0 }
 0x11a   :  { %v257_v21 = vadd.f32 %v256_v20, %v1713_v32  ;;  %471 = vmatprep.mubr.f32.mxu1 %v316_v16  ;;  %1466 = vmatpush1.bf16.msra.mxu0 %v1465_v13 }
 0x11b   :  { %472 = vmatmul.mubr.f32.gmra.mrb[10].mxu1 %v315_v18  ;;  %v317_v24 = vmax.f32 %v255_v19, 0.0 }
 0x11c   :  { %v318_v22 = vmax.f32 %v257_v21, 0.0  ;;  %v260_v23 = vpop.f32.mrb[18].mxu0 }
 0x11d   :  { %v261_v25 = vadd.f32 %v260_v23, %v1709_v31  ;;  %v262_v26 = vpop.f32.mrb[19].mxu0 }
 0x11e   :  { %v263_v29 = vadd.f32 %v262_v26, %v1713_v32  ;;  %476 = vmatprep.mubr.f32.mxu1 %v318_v22 }
 0x11f   :  { %477 = vmatmul.mubr.f32.gmra.mrb[12].mxu1 %v317_v24  ;;  %v319_v35 = vmax.f32 %v261_v25, 0.0 }
 0x120   :  { %v320_v33 = vmax.f32 %v263_v29, 0.0  ;;  %v266_v34 = vpop.f32.mrb[20].mxu0 }
 0x121   :  { %v267_v36 = vadd.f32 %v266_v34, %v1709_v31  ;;  %v268_v37 = vpop.f32.mrb[21].mxu0 }
 0x122   :  { %v269_v38 = vadd.f32 %v268_v37, %v1713_v32  ;;  %481 = vmatprep.mubr.f32.mxu1 %v320_v33 }
 0x123   :  { %482 = vmatmul.mubr.f32.gmra.mrb[14].mxu1 %v319_v35  ;;  %v321_v41 = vmax.f32 %v267_v36, 0.0 }
 0x124   :  { %v322_v39 = vmax.f32 %v269_v38, 0.0  ;;  %v272_v40 = vpop.f32.mrb[22].mxu0 }
 0x125   :  { %v273_v42 = vadd.f32 %v272_v40, %v1709_v31  ;;  %v274_v43 = vpop.f32.mrb[23].mxu0 }
 0x126   :  { %v275_v44 = vadd.f32 %v274_v43, %v1713_v32  ;;  %486 = vmatprep.mubr.f32.mxu1 %v322_v39 }
 0x127   :  { %487 = vmatmul.mubr.f32.gmra.mrb[16].mxu1 %v321_v41  ;;  %v323_v47 = vmax.f32 %v273_v42, 0.0 }
 0x128   :  { %v324_v45 = vmax.f32 %v275_v44, 0.0  ;;  %v278_v46 = vpop.f32.mrb[24].mxu0 }
 0x129   :  { %v279_v48 = vadd.f32 %v278_v46, %v1709_v31  ;;  %v280_v49 = vpop.f32.mrb[25].mxu0 }
 0x12a   :  { %v281_v50 = vadd.f32 %v280_v49, %v1713_v32  ;;  %491 = vmatprep.mubr.f32.mxu1 %v324_v45 }
 0x12b   :  { %492 = vmatmul.mubr.f32.gmra.mrb[18].mxu1 %v323_v47  ;;  %v325_v53 = vmax.f32 %v279_v48, 0.0 }
 0x12c   :  { %v326_v51 = vmax.f32 %v281_v50, 0.0  ;;  %v284_v52 = vpop.f32.mrb[26].mxu0 }
 0x12d   :  { %v285_v54 = vadd.f32 %v284_v52, %v1709_v31  ;;  %v286_v55 = vpop.f32.mrb[27].mxu0 }
 0x12e   :  { %v287_v56 = vadd.f32 %v286_v55, %v1713_v32  ;;  %496 = vmatprep.mubr.f32.mxu1 %v326_v51 }
 0x12f   :  { %497 = vmatmul.mubr.f32.gmra.mrb[20].mxu1 %v325_v53  ;;  %v327_v59 = vmax.f32 %v285_v54, 0.0 }
 0x130   :  { %v328_v57 = vmax.f32 %v287_v56, 0.0  ;;  %v290_v58 = vpop.f32.mrb[28].mxu0 }
 0x131   :  { %v291_v60 = vadd.f32 %v290_v58, %v1709_v31  ;;  %v292_v61 = vpop.f32.mrb[29].mxu0 }
 0x132   :  { %v293_v62 = vadd.f32 %v292_v61, %v1713_v32  ;;  %501 = vmatprep.mubr.f32.mxu1 %v328_v57 }
 0x133   :  { %502 = vmatmul.mubr.f32.gmra.mrb[22].mxu1 %v327_v59  ;;  %v329_v2 = vmax.f32 %v291_v60, 0.0 }
 0x134   :  { %v330_v63 = vmax.f32 %v293_v62, 0.0  ;;  %v296_v1 = vpop.f32.mrb[30].mxu0 }
 0x135   :  { %v297_v3 = vadd.f32 %v296_v1, %v1709_v31  ;;  %v298_v4 = vpop.f32.mrb[31].mxu0  ;;  %v1751_v31 = vld [vmem:[%s2107_s3 + $0x2] ss:$0 sm:$0xff] }
 0x136   :  { %v299_v5 = vadd.f32 %v298_v4, %v1713_v32  ;;  %506 = vmatprep.mubr.f32.mxu1 %v330_v63 }
 0x137   :  { %507 = vmatmul.mubr.f32.gmra.mrb[24].mxu1 %v329_v2  ;;  %v331_v7 = vmax.f32 %v297_v3, 0.0 }
 0x138   :  { %v332_v6 = vmax.f32 %v299_v5, 0.0 }
 0x13a   :  { %511 = vmatprep.mubr.f32.mxu1 %v332_v6 }
 0x13b   :  { %512 = vmatmul.mubr.f32.gmra.mrb[26].mxu1 %v331_v7 }
 0x1d2   :  { %v1287_v14 = vpop.f32.mrb[32].mxu0 }
 0x1d3   :  { %v1288_v32 = vpop.f32.mrb[33].mxu0 }
 0x1d4   :  { %v1289_v15 = vadd.f32 %v1288_v32, %v1287_v14 }
 0x1d6   :  { %v1754_v16 = vadd.f32 %v1289_v15, %v1751_v31  ;;  %v1290_v17 = vpop.f32.mrb[34].mxu0 }
 0x1d7   :  { %v1291_v18 = vpop.f32.mrb[35].mxu0 }
 0x1d8   :  { %v517_v19 = vmul.f32 0.5, %v1754_v16  ;;  %v1292_v20 = vadd.f32 %v1291_v18, %v1290_v17 }
 0x1da   :  { %v533_v21 = vmul.f32 1.442695, %v517_v19  ;;  %v1758_v22 = vadd.f32 %v1292_v20, %v1751_v31  ;;  %v1293_v23 = vpop.f32.mrb[0].mxu1 }
 0x1db   :  { %v1294_v24 = vpop.f32.mrb[1].mxu1 }
 0x1dc   :  { %1521 = vpow2.f32 %v533_v21  ;;  %v518_v25 = vmul.f32 0.5, %v1758_v22  ;;  %v1295_v26 = vadd.f32 %v1294_v24, %v1293_v23 }
 0x1de   :  { %v535_v29 = vmul.f32 1.442695, %v518_v25  ;;  %v1762_v33 = vadd.f32 %v1295_v26, %v1751_v31  ;;  %v1296_v34 = vpop.f32.mrb[2].mxu1 }
 0x1df   :  { %v1297_v35 = vpop.f32.mrb[3].mxu1 }
 0x1e0   :  { %1523 = vpow2.f32 %v535_v29  ;;  %v519_v36 = vmul.f32 0.5, %v1762_v33  ;;  %v1298_v37 = vadd.f32 %v1297_v35, %v1296_v34 }
 0x1e2   :  { %v537_v38 = vmul.f32 1.442695, %v519_v36  ;;  %v1766_v39 = vadd.f32 %v1298_v37, %v1751_v31  ;;  %v1299_v40 = vpop.f32.mrb[4].mxu1 }
 0x1e3   :  { %v1300_v41 = vpop.f32.mrb[5].mxu1 }
 0x1e4   :  { %1525 = vpow2.f32 %v537_v38  ;;  %v520_v42 = vmul.f32 0.5, %v1766_v39  ;;  %v1301_v43 = vadd.f32 %v1300_v41, %v1299_v40 }
 0x1e6   :  { %v1522_v44 = vpop.eup %1521  ;;  %v539_v45 = vmul.f32 1.442695, %v520_v42  ;;  %v1770_v46 = vadd.f32 %v1301_v43, %v1751_v31  ;;  %v1302_v47 = vpop.f32.mrb[6].mxu1 }
 0x1e7   :  { %v1303_v48 = vpop.f32.mrb[7].mxu1  ;;  %581 = vrot.lane.b32.xlu0 %v1522_v44, %s1581_s10 }
 0x1e8   :  { %1527 = vpow2.f32 %v539_v45  ;;  %v521_v49 = vmul.f32 0.5, %v1770_v46  ;;  %v1304_v50 = vadd.f32 %v1303_v48, %v1302_v47 }
 0x1ea   :  { %v1524_v51 = vpop.eup %1523  ;;  %v541_v52 = vmul.f32 1.442695, %v521_v49  ;;  %v1775_v53 = vadd.f32 %v1304_v50, %v1751_v31  ;;  %v1305_v54 = vpop.f32.mrb[8].mxu1 }
 0x1eb   :  { %v1306_v55 = vpop.f32.mrb[9].mxu1  ;;  %583 = vrot.lane.b32.xlu0 %v1524_v51, %s1581_s10 }
 0x1ec   :  { %1529 = vpow2.f32 %v541_v52  ;;  %v522_v56 = vmul.f32 0.5, %v1775_v53  ;;  %v1307_v57 = vadd.f32 %v1306_v55, %v1305_v54 }
 0x1ee   :  { %v1526_v58 = vpop.eup %1525  ;;  %v543_v59 = vmul.f32 1.442695, %v522_v56  ;;  %v1780_v60 = vadd.f32 %v1307_v57, %v1751_v31  ;;  %v1308_v61 = vpop.f32.mrb[10].mxu1 }
 0x1ef   :  { %v1309_v62 = vpop.f32.mrb[11].mxu1  ;;  %585 = vrot.lane.b32.xlu1 %v1526_v58, %s1581_s10 }
 0x1f0   :  { %1531 = vpow2.f32 %v543_v59  ;;  %v523_v63 = vmul.f32 0.5, %v1780_v60  ;;  %v1310_v1 = vadd.f32 %v1309_v62, %v1308_v61 }
 0x1f2   :  { %v1528_v2 = vpop.eup %1527  ;;  %v545_v3 = vmul.f32 1.442695, %v523_v63  ;;  %v1785_v4 = vadd.f32 %v1310_v1, %v1751_v31  ;;  %v1311_v5 = vpop.f32.mrb[12].mxu1 }
 0x1f3   :  { %v1312_v6 = vpop.f32.mrb[13].mxu1  ;;  %587 = vrot.lane.b32.xlu1 %v1528_v2, %s1581_s10 }
 0x1f4   :  { %1533 = vpow2.f32 %v545_v3  ;;  %v524_v7 = vmul.f32 0.5, %v1785_v4  ;;  %v1313_v8 = vadd.f32 %v1312_v6, %v1311_v5 }
 0x1f6   :  { %v1530_v9 = vpop.eup %1529  ;;  %v547_v10 = vmul.f32 1.442695, %v524_v7  ;;  %v1790_v11 = vadd.f32 %v1313_v8, %v1751_v31  ;;  %v1314_v12 = vpop.f32.mrb[14].mxu1 }
 0x1f7   :  { %v1315_v13 = vpop.f32.mrb[15].mxu1  ;;  %589 = vrot.lane.b32.xlu0 %v1530_v9, %s1581_s10 }
 0x1f8   :  { %1535 = vpow2.f32 %v547_v10  ;;  %v525_v14 = vmul.f32 0.5, %v1790_v11  ;;  %v1316_v32 = vadd.f32 %v1315_v13, %v1314_v12 }
 0x1fa   :  { %v1532_v15 = vpop.eup %1531  ;;  %v549_v17 = vmul.f32 1.442695, %v525_v14  ;;  %v1795_v18 = vadd.f32 %v1316_v32, %v1751_v31  ;;  %v1317_v19 = vpop.f32.mrb[16].mxu1 }
 0x1fb   :  { %v1318_v20 = vpop.f32.mrb[17].mxu1  ;;  %591 = vrot.lane.b32.xlu1 %v1532_v15, %s1581_s10 }
 0x1fc   :  { %1537 = vpow2.f32 %v549_v17  ;;  %v526_v21 = vmul.f32 0.5, %v1795_v18  ;;  %v1319_v23 = vadd.f32 %v1318_v20, %v1317_v19  ;;  %v936_v17 = vld [vmem:[#allocation2 + $0x358] sm:$0xff]  ;;  %v919_v19 = vld [vmem:[#allocation2 + $0x28] sm:$0xff] }
 0x1fe   :  { %v1534_v24 = vpop.eup %1533  ;;  %v551_v25 = vmul.f32 1.442695, %v526_v21  ;;  %v1800_v26 = vadd.f32 %v1319_v23, %v1751_v31  ;;  %v1320_v29 = vpop.f32.mrb[18].mxu1  ;;  %v920_v21 = vld [vmem:[#allocation2 + $0x58] sm:$0xff]  ;;  %v937_v23 = vld [vmem:[#allocation2 + $0x388] sm:$0xff] }
 0x1ff   :  { %v1321_v34 = vpop.f32.mrb[19].mxu1  ;;  %593 = vrot.lane.b32.xlu0 %v1534_v24, %s1581_s10  ;;  %v938_v24 = vld [vmem:[#allocation2 + $0x3b8] sm:$0xff] }
 0x200   :  { %1539 = vpow2.f32 %v551_v25  ;;  %v527_v35 = vmul.f32 0.5, %v1800_v26  ;;  %v1322_v36 = vadd.f32 %v1321_v34, %v1320_v29  ;;  %v1469_v25 = vpack.c.bf16 %v920_v21, %v919_v19  ;;  %v921_v34 = vld [vmem:[#allocation2 + $0x88] sm:$0xff] }
 0x201   :  { %v1471_v29 = vpack.c.bf16 %v938_v24, %v937_v23  ;;  %v48_v21 = vld [vmem:[%s2105_s1 + $0x8] sm:$0xff] }
 0x202   :  { %v1536_v37 = vpop.eup %1535  ;;  %v553_v38 = vmul.f32 1.442695, %v527_v35  ;;  %v1805_v40 = vadd.f32 %v1322_v36, %v1751_v31  ;;  %v1323_v41 = vpop.f32.mrb[20].mxu1  ;;  %v922_v35 = vld [vmem:[#allocation2 + $0xb8] sm:$0xff]  ;;  %v939_v36 = vld [vmem:[#allocation2 + $0x3e8] sm:$0xff] }
 0x203   :  { %v1324_v42 = vpop.f32.mrb[21].mxu1  ;;  %595 = vrot.lane.b32.xlu1 %v1536_v37, %s1581_s10  ;;  %v940_v37 = vld [vmem:[#allocation2 + $0x418] sm:$0xff] }
 0x204   :  { %1541 = vpow2.f32 %v553_v38  ;;  %v528_v43 = vmul.f32 0.5, %v1805_v40  ;;  %v1325_v44 = vadd.f32 %v1324_v42, %v1323_v41  ;;  %v1473_v38 = vpack.c.bf16 %v922_v35, %v921_v34  ;;  %v923_v42 = vld [vmem:[#allocation2 + $0xe8] sm:$0xff] }
 0x205   :  { %v1475_v41 = vpack.c.bf16 %v940_v37, %v939_v36 }
 0x206   :  { %v1538_v45 = vpop.eup %1537  ;;  %v555_v47 = vmul.f32 1.442695, %v528_v43  ;;  %v1810_v48 = vadd.f32 %v1325_v44, %v1751_v31  ;;  %v1326_v49 = vpop.f32.mrb[22].mxu1  ;;  %v924_v43 = vld [vmem:[#allocation2 + $0x118] sm:$0xff]  ;;  %v941_v44 = vld [vmem:[#allocation2 + $0x448] sm:$0xff] }
 0x207   :  { %v1327_v50 = vpop.f32.mrb[23].mxu1  ;;  %597 = vrot.lane.b32.xlu0 %v1538_v45, %s1581_s10  ;;  %v942_v45 = vld [vmem:[#allocation2 + $0x478] sm:$0xff] }
 0x208   :  { %1543 = vpow2.f32 %v555_v47  ;;  %v529_v51 = vmul.f32 0.5, %v1810_v48  ;;  %v1328_v52 = vadd.f32 %v1327_v50, %v1326_v49  ;;  %v1477_v47 = vpack.c.bf16 %v924_v43, %v923_v42  ;;  %v925_v50 = vld [vmem:[#allocation2 + $0x148] sm:$0xff] }
 0x209   :  { %v1479_v49 = vpack.c.bf16 %v942_v45, %v941_v44 }
 0x20a   :  { %v1540_v54 = vpop.eup %1539  ;;  %v557_v55 = vmul.f32 1.442695, %v529_v51  ;;  %v1815_v56 = vadd.f32 %v1328_v52, %v1751_v31  ;;  %v1329_v57 = vpop.f32.mrb[24].mxu1  ;;  %v926_v51 = vld [vmem:[#allocation2 + $0x178] sm:$0xff]  ;;  %v943_v52 = vld [vmem:[#allocation2 + $0x4a8] sm:$0xff] }
 0x20b   :  { %v1330_v58 = vpop.f32.mrb[25].mxu1  ;;  %599 = vrot.lane.b32.xlu1 %v1540_v54, %s1581_s10  ;;  %v944_v54 = vld [vmem:[#allocation2 + $0x4d8] sm:$0xff] }
 0x20c   :  { %1545 = vpow2.f32 %v557_v55  ;;  %v530_v59 = vmul.f32 0.5, %v1815_v56  ;;  %v1331_v61 = vadd.f32 %v1330_v58, %v1329_v57  ;;  %v1481_v55 = vpack.c.bf16 %v926_v51, %v925_v50  ;;  %v927_v58 = vld [vmem:[#allocation2 + $0x1a8] sm:$0xff] }
 0x20d   :  { %v1483_v57 = vpack.c.bf16 %v944_v54, %v943_v52 }
 0x20e   :  { %v1542_v62 = vpop.eup %1541  ;;  %v559_v63 = vmul.f32 1.442695, %v530_v59  ;;  %v1820_v1 = vadd.f32 %v1331_v61, %v1751_v31  ;;  %v1332_v2 = vpop.f32.mrb[26].mxu1  ;;  %v928_v59 = vld [vmem:[#allocation2 + $0x1d8] sm:$0xff]  ;;  %v945_v61 = vld [vmem:[#allocation2 + $0x508] sm:$0xff] }
 0x20f   :  { %v1333_v3 = vpop.f32.mrb[27].mxu1  ;;  %601 = vrot.lane.b32.xlu0 %v1542_v62, %s1581_s10  ;;  %v946_v62 = vld [vmem:[#allocation2 + $0x538] sm:$0xff] }
 0x210   :  { %1547 = vpow2.f32 %v559_v63  ;;  %v531_v5 = vmul.f32 0.5, %v1820_v1  ;;  %v1334_v6 = vadd.f32 %v1333_v3, %v1332_v2  ;;  %v1485_v63 = vpack.c.bf16 %v928_v59, %v927_v58  ;;  %v929_v3 = vld [vmem:[#allocation2 + $0x208] sm:$0xff] }
 0x211   :  { %v1487_v2 = vpack.c.bf16 %v946_v62, %v945_v61 }
 0x212   :  { %v1544_v7 = vpop.eup %1543  ;;  %v561_v8 = vmul.f32 1.442695, %v531_v5  ;;  %v1825_v9 = vadd.f32 %v1334_v6, %v1751_v31  ;;  %v935_v31 = vld [vmem:[#allocation2 + $0x328] sm:$0xff]  ;;  %v930_v5 = vld [vmem:[#allocation2 + $0x238] sm:$0xff] }
 0x213   :  { %603 = vrot.lane.b32.xlu1 %v1544_v7, %s1581_s10  ;;  %v1467_v20 = vpack.c.bf16 %v936_v17, %v935_v31  ;;  %v947_v6 = vld [vmem:[#allocation2 + $0x568] sm:$0xff]  ;;  %v948_v7 = vld [vmem:[#allocation2 + $0x598] sm:$0xff]  ;;  %v47_v17 = vld [vmem:[%s2105_s1] sm:$0xff] }
 0x214   :  { %1549 = vpow2.f32 %v561_v8  ;;  %v532_v10 = vmul.f32 0.5, %v1825_v9  ;;  %v1489_v8 = vpack.c.bf16 %v930_v5, %v929_v3 }
 0x215   :  { %1468 = vmatprep.subr.bf16.mxu1 %v1467_v20 }
 0x216   :  { %v1546_v12 = vpop.eup %1545  ;;  %v563_v13 = vmul.f32 1.442695, %v532_v10  ;;  %1470 = vmatpush3.bf16.msra.mxu1 %v1469_v25  ;;  %v1491_v10 = vpack.c.bf16 %v948_v7, %v947_v6 }
 0x217   :  { %605 = vrot.lane.b32.xlu0 %v1546_v12, %s1581_s10  ;;  %1472 = vmatprep.subr.bf16.mxu1 %v1471_v29  ;;  %v931_v12 = vld [vmem:[#allocation2 + $0x268] sm:$0xff]  ;;  %v49_v29 = vld [vmem:[%s2105_s1 + $0x10] sm:$0xff] }
 0x218   :  { %1551 = vpow2.f32 %v563_v13  ;;  %v932_v13 = vld [vmem:[#allocation2 + $0x298] sm:$0xff] }
 0x21a   :  { %v1548_v14 = vpop.eup %1547  ;;  %1474 = vmatpush3.bf16.msra.mxu1 %v1473_v38 }
 0x21b   :  { %607 = vrot.lane.b32.xlu1 %v1548_v14, %s1581_s10  ;;  %1476 = vmatprep.subr.bf16.mxu1 %v1475_v41  ;;  %v949_v14 = vld [vmem:[#allocation2 + $0x5c8] sm:$0xff] }
 0x21e   :  { %v1550_v32 = vpop.eup %1549  ;;  %1478 = vmatpush3.bf16.msra.mxu1 %v1477_v47 }
 0x21f   :  { %609 = vrot.lane.b32.xlu0 %v1550_v32, %s1581_s10  ;;  %1480 = vmatprep.subr.bf16.mxu1 %v1479_v49  ;;  %v950_v32 = vld [vmem:[#allocation2 + $0x5f8] sm:$0xff] }
 0x220   :  { %v1495_v31 = vpack.c.bf16 %v950_v32, %v949_v14 }
 0x222   :  { %v1552_v15 = vpop.eup %1551  ;;  %1482 = vmatpush3.bf16.msra.mxu1 %v1481_v55 }
 0x223   :  { %611 = vrot.lane.b32.xlu1 %v1552_v15, %s1581_s10  ;;  %1119 = vrot.lane.b32.xlu0 %v1754_v16, %s1582_s11  ;;  %v1493_v15 = vpack.c.bf16 %v932_v13, %v931_v12 }
 0x224   :  { %1484 = vmatprep.subr.bf16.mxu1 %v1483_v57 }
 0x226   :  { %1486 = vmatpush3.bf16.msra.mxu1 %v1485_v63 }
 0x227   :  { %1121 = vrot.lane.b32.xlu1 %v1758_v22, %s1582_s11  ;;  %1123 = vrot.lane.b32.xlu0 %v1762_v33, %s1582_s11 }
 0x228   :  { %1488 = vmatprep.subr.bf16.mxu1 %v1487_v2 }
 0x22a   :  { %1490 = vmatpush3.bf16.msra.mxu1 %v1489_v8 }
 0x22b   :  { %1125 = vrot.lane.b32.xlu1 %v1766_v39, %s1582_s11  ;;  %1127 = vrot.lane.b32.xlu0 %v1770_v46, %s1582_s11 }
 0x22c   :  { %1492 = vmatprep.subr.bf16.mxu1 %v1491_v10 }
 0x22e   :  { %1494 = vmatpush3.bf16.msra.mxu1 %v1493_v15 }
 0x22f   :  { %1129 = vrot.lane.b32.xlu1 %v1775_v53, %s1582_s11  ;;  %1131 = vrot.lane.b32.xlu0 %v1780_v60, %s1582_s11 }
 0x230   :  { %1496 = vmatprep.subr.bf16.mxu1 %v1495_v31 }
 0x233   :  { %1133 = vrot.lane.b32.xlu1 %v1785_v4, %s1582_s11  ;;  %1135 = vrot.lane.b32.xlu0 %v1790_v11, %s1582_s11 }
 0x237   :  { %1137 = vrot.lane.b32.xlu1 %v1795_v18, %s1582_s11  ;;  %1139 = vrot.lane.b32.xlu0 %v1800_v26, %s1582_s11 }
 0x23b   :  { %1141 = vrot.lane.b32.xlu1 %v1805_v40, %s1582_s11  ;;  %1143 = vrot.lane.b32.xlu0 %v1810_v48, %s1582_s11 }
 0x23f   :  { %1145 = vrot.lane.b32.xlu1 %v1815_v56, %s1582_s11  ;;  %1147 = vrot.lane.b32.xlu0 %v1820_v1, %s1582_s11 }
 0x243   :  { %1149 = vrot.lane.b32.xlu1 %v1825_v9, %s1582_s11 }
 0x259   :  { %v582_v19 = vpop.permute.xlu0 %581 }
 0x25a   :  { %v629_v20 = vmul.f32 %v582_v19, %v47_v17 }
 0x25c   :  { %v645_v23 = vadd.f32 %v629_v20, %v1754_v16  ;;  %v50_v16 = vld [vmem:[%s2105_s1 + $0x18] sm:$0xff] }
 0x25d   :  { %v584_v24 = vpop.permute.xlu0 %583 }
 0x25e   :  { %v630_v25 = vmul.f32 %v584_v24, %v48_v21  ;;  %1238 = vmatmul.mubr.msk.f32.vlgmr.msra.gmra.mrb[36].mxu0 %vm677_vm1, %v645_v23 }
 0x25f   :  { %796 = vmatprep.mubr.f32.mxu0 %v1580_v0 }
 0x260   :  { %v646_v34 = vadd.f32 %v630_v25, %v1758_v22  ;;  %v51_v22 = vld [vmem:[%s2105_s1 + $0x20] sm:$0xff]  ;;  %v933_v25 = vld [vmem:[#allocation2 + $0x2c8] sm:$0xff] }
 0x261   :  { %v586_v35 = vpop.permute.xlu1 %585 }
 0x262   :  { %v631_v36 = vmul.f32 %v586_v35, %v49_v29  ;;  %1239 = vmatmul.mubr.msk.f32.gmra.mrb[38].mxu0 %vm677_vm1, %v646_v34  ;;  %v934_v29 = vld [vmem:[#allocation2 + $0x2f8] sm:$0xff]  ;;  %v665_v35 = vld [vmem:[%s2107_s3 + $0x3] sm:$0x3] }
 0x263   :  { %802 = vmatprep.mubr.f32.mxu0 %v1580_v0  ;;  %v1497_v34 = vpack.c.bf16 %v934_v29, %v933_v25 }
 0x264   :  { %v647_v37 = vadd.f32 %v631_v36, %v1762_v33  ;;  %v52_v33 = vld [vmem:[%s2105_s1 + $0x28] sm:$0xff]  ;;  %v1969_v36 = vrot.slane %v665_v35, %v87_v30 }
 0x265   :  { %v588_v38 = vpop.permute.xlu1 %587  ;;  %1498 = vmatpush3.bf16.msra.mxu1 %v1497_v34 }
 0x266   :  { %v632_v41 = vmul.f32 %v588_v38, %v50_v16  ;;  %1240 = vmatmul.mubr.msk.f32.gmra.mrb[40].mxu0 %vm677_vm1, %v647_v37 }
 0x267   :  { %808 = vmatprep.mubr.f32.mxu0 %v1580_v0 }
 0x268   :  { %v648_v42 = vadd.f32 %v632_v41, %v1766_v39  ;;  %v53_v39 = vld [vmem:[%s2105_s1 + $0x30] sm:$0xff] }
 0x269   :  { %v590_v43 = vpop.permute.xlu0 %589 }
 0x26a   :  { %v633_v44 = vmul.f32 %v590_v43, %v51_v22  ;;  %1241 = vmatmul.mubr.msk.f32.gmra.mrb[42].mxu0 %vm677_vm1, %v648_v42 }
 0x26b   :  { %814 = vmatprep.mubr.f32.mxu0 %v1580_v0 }
 0x26c   :  { %v649_v45 = vadd.f32 %v633_v44, %v1770_v46  ;;  %v54_v46 = vld [vmem:[%s2105_s1 + $0x38] sm:$0xff] }
 0x26d   :  { %v592_v47 = vpop.permute.xlu1 %591 }
 0x26e   :  { %v634_v49 = vmul.f32 %v592_v47, %v52_v33  ;;  %1242 = vmatmul.mubr.msk.f32.gmra.mrb[44].mxu0 %vm677_vm1, %v649_v45 }
 0x26f   :  { %820 = vmatprep.mubr.f32.mxu0 %v1580_v0 }
 0x270   :  { %v650_v50 = vadd.f32 %v634_v49, %v1775_v53  ;;  %v55_v53 = vld [vmem:[%s2105_s1 + $0x40] sm:$0xff] }
 0x271   :  { %v594_v51 = vpop.permute.xlu0 %593 }
 0x272   :  { %v635_v52 = vmul.f32 %v594_v51, %v53_v39  ;;  %1243 = vmatmul.mubr.msk.f32.gmra.mrb[46].mxu0 %vm677_vm1, %v650_v50 }
 0x273   :  { %826 = vmatprep.mubr.f32.mxu0 %v1580_v0 }
 0x274   :  { %v651_v54 = vadd.f32 %v635_v52, %v1780_v60  ;;  %v56_v60 = vld [vmem:[%s2105_s1 + $0x48] sm:$0xff] }
 0x275   :  { %v596_v55 = vpop.permute.xlu1 %595 }
 0x276   :  { %v636_v57 = vmul.f32 %v596_v55, %v54_v46  ;;  %1244 = vmatmul.mubr.msk.f32.gmra.mrb[48].mxu0 %vm677_vm1, %v651_v54 }
 0x277   :  { %832 = vmatprep.mubr.f32.mxu0 %v1580_v0 }
 0x278   :  { %v652_v58 = vadd.f32 %v636_v57, %v1785_v4  ;;  %v57_v4 = vld [vmem:[%s2105_s1 + $0x50] sm:$0xff] }
 0x279   :  { %v598_v59 = vpop.permute.xlu0 %597 }
 0x27a   :  { %v637_v61 = vmul.f32 %v598_v59, %v55_v53  ;;  %1245 = vmatmul.mubr.msk.f32.gmra.mrb[50].mxu0 %vm677_vm1, %v652_v58 }
 0x27b   :  { %838 = vmatprep.mubr.f32.mxu0 %v1580_v0 }
 0x27c   :  { %v653_v62 = vadd.f32 %v637_v61, %v1790_v11  ;;  %v58_v11 = vld [vmem:[%s2105_s1 + $0x58] sm:$0xff] }
 0x27d   :  { %v600_v63 = vpop.permute.xlu1 %599 }
 0x27e   :  { %v638_v2 = vmul.f32 %v600_v63, %v56_v60  ;;  %1246 = vmatmul.mubr.msk.f32.gmra.mrb[52].mxu0 %vm677_vm1, %v653_v62 }
 0x27f   :  { %844 = vmatprep.mubr.f32.mxu0 %v1580_v0 }
 0x280   :  { %v654_v3 = vadd.f32 %v638_v2, %v1795_v18  ;;  %v59_v18 = vld [vmem:[%s2105_s1 + $0x60] sm:$0xff] }
 0x281   :  { %v602_v5 = vpop.permute.xlu0 %601 }
 0x282   :  { %v639_v6 = vmul.f32 %v602_v5, %v57_v4  ;;  %1247 = vmatmul.mubr.msk.f32.gmra.mrb[54].mxu0 %vm677_vm1, %v654_v3 }
 0x283   :  { %850 = vmatprep.mubr.f32.mxu0 %v1580_v0 }
 0x284   :  { %v655_v7 = vadd.f32 %v639_v6, %v1800_v26  ;;  %v60_v26 = vld [vmem:[%s2105_s1 + $0x68] sm:$0xff] }
 0x285   :  { %v604_v8 = vpop.permute.xlu1 %603 }
 0x286   :  { %v640_v10 = vmul.f32 %v604_v8, %v58_v11  ;;  %1248 = vmatmul.mubr.msk.f32.gmra.mrb[56].mxu0 %vm677_vm1, %v655_v7 }
 0x287   :  { %856 = vmatprep.mubr.f32.mxu0 %v1580_v0 }
 0x288   :  { %v656_v12 = vadd.f32 %v640_v10, %v1805_v40  ;;  %v61_v40 = vld [vmem:[%s2105_s1 + $0x70] sm:$0xff] }
 0x289   :  { %v606_v13 = vpop.permute.xlu0 %605 }
 0x28a   :  { %v641_v14 = vmul.f32 %v606_v13, %v59_v18  ;;  %1249 = vmatmul.mubr.msk.f32.gmra.mrb[58].mxu0 %vm677_vm1, %v656_v12 }
 0x28b   :  { %862 = vmatprep.mubr.f32.mxu0 %v1580_v0 }
 0x28c   :  { %v657_v32 = vadd.f32 %v641_v14, %v1810_v48  ;;  %v62_v48 = vld [vmem:[%s2105_s1 + $0x78] sm:$0xff] }
 0x28d   :  { %v608_v15 = vpop.permute.xlu1 %607 }
 0x28e   :  { %v642_v31 = vmul.f32 %v608_v15, %v60_v26  ;;  %1250 = vmatmul.mubr.msk.f32.gmra.mrb[60].mxu0 %vm677_vm1, %v657_v32 }
 0x28f   :  { %868 = vmatprep.mubr.f32.mxu0 %v1580_v0 }
 0x290   :  { %v658_v17 = vadd.f32 %v642_v31, %v1815_v56 }
 0x291   :  { %v610_v19 = vpop.permute.xlu0 %609 }
 0x292   :  { %v643_v20 = vmul.f32 %v610_v19, %v61_v40  ;;  %1251 = vmatmul.mubr.msk.f32.gmra.mrb[62].mxu0 %vm677_vm1, %v658_v17 }
 0x293   :  { %874 = vmatprep.mubr.f32.mxu0 %v1580_v0 }
 0x294   :  { %v659_v21 = vadd.f32 %v643_v20, %v1820_v1  ;;  %v1965_v1 = vrot.slane %v665_v35, %v83_v28 }
 0x295   :  { %v612_v23 = vpop.permute.xlu1 %611 }
 0x296   :  { %v644_v24 = vmul.f32 %v612_v23, %v62_v48  ;;  %1252 = vmatmul.mubr.msk.f32.gmra.mrb[64].mxu0 %vm677_vm1, %v659_v21 }
 0x297   :  { %880 = vmatprep.mubr.f32.mxu0 %v1580_v0 }
 0x298   :  { %v660_v56 = vadd.f32 %v644_v24, %v1825_v9 }
 0x29a   :  { %1253 = vmatmul.mubr.msk.f32.gmra.mrb[66].mxu0 %vm677_vm1, %v660_v56 }
 0x331   :  { %v792_v0 = vpop.f32.mrb[36].mxu0 }
 0x332   :  { %v793_v9 = vadd.f32 %v792_v0, %v1965_v1  ;;  %v794_v16 = vpop.f32.mrb[37].mxu0 }
 0x333   :  { %v795_v37 = vadd.f32 %v794_v16, %v1969_v36 }
 0x334   :  { %v887_v22 = vmax.f32 %v793_v9, 0.0 }
 0x335   :  { %v888_v38 = vmax.f32 %v795_v37, 0.0  ;;  %v798_v41 = vpop.f32.mrb[38].mxu0 }
 0x336   :  { %v799_v42 = vadd.f32 %v798_v41, %v1965_v1  ;;  %v800_v43 = vpop.f32.mrb[39].mxu0 }
 0x337   :  { %v801_v44 = vadd.f32 %v800_v43, %v1969_v36  ;;  %1022 = vmatprep.mubr.f32.mxu1 %v888_v38 }
 0x338   :  { %1023 = vmatmul.mubr.f32.vlgmr.msra.gmra.mrb[28].mxu1 %v887_v22  ;;  %v889_v30 = vmax.f32 %v799_v42, 0.0 }
 0x339   :  { %v890_v28 = vmax.f32 %v801_v44, 0.0  ;;  %v804_v27 = vpop.f32.mrb[40].mxu0 }
 0x33a   :  { %v805_v33 = vadd.f32 %v804_v27, %v1965_v1  ;;  %v806_v45 = vpop.f32.mrb[41].mxu0 }
 0x33b   :  { %v807_v47 = vadd.f32 %v806_v45, %v1969_v36  ;;  %1027 = vmatprep.mubr.f32.mxu1 %v890_v28 }
 0x33c   :  { %1028 = vmatmul.mubr.f32.gmra.mrb[30].mxu1 %v889_v30  ;;  %v891_v50 = vmax.f32 %v805_v33, 0.0 }
 0x33d   :  { %v892_v49 = vmax.f32 %v807_v47, 0.0  ;;  %v810_v39 = vpop.f32.mrb[42].mxu0 }
 0x33e   :  { %v811_v51 = vadd.f32 %v810_v39, %v1965_v1  ;;  %v812_v52 = vpop.f32.mrb[43].mxu0 }
 0x33f   :  { %v813_v46 = vadd.f32 %v812_v52, %v1969_v36  ;;  %1032 = vmatprep.mubr.f32.mxu1 %v892_v49 }
 0x340   :  { %1033 = vmatmul.mubr.f32.gmra.mrb[32].mxu1 %v891_v50  ;;  %v893_v57 = vmax.f32 %v811_v51, 0.0 }
 0x341   :  { %v894_v54 = vmax.f32 %v813_v46, 0.0  ;;  %v816_v55 = vpop.f32.mrb[44].mxu0 }
 0x342   :  { %v817_v53 = vadd.f32 %v816_v55, %v1965_v1  ;;  %v818_v58 = vpop.f32.mrb[45].mxu0 }
 0x343   :  { %v819_v59 = vadd.f32 %v818_v58, %v1969_v36  ;;  %1037 = vmatprep.mubr.f32.mxu1 %v894_v54 }
 0x344   :  { %1038 = vmatmul.mubr.f32.gmra.mrb[34].mxu1 %v893_v57  ;;  %v895_v62 = vmax.f32 %v817_v53, 0.0 }
 0x345   :  { %v896_v61 = vmax.f32 %v819_v59, 0.0  ;;  %v822_v60 = vpop.f32.mrb[46].mxu0 }
 0x346   :  { %v823_v63 = vadd.f32 %v822_v60, %v1965_v1  ;;  %v824_v2 = vpop.f32.mrb[47].mxu0 }
 0x347   :  { %v825_v4 = vadd.f32 %v824_v2, %v1969_v36  ;;  %1042 = vmatprep.mubr.f32.mxu1 %v896_v61 }
 0x348   :  { %1043 = vmatmul.mubr.f32.gmra.mrb[36].mxu1 %v895_v62  ;;  %v897_v6 = vmax.f32 %v823_v63, 0.0 }
 0x349   :  { %v898_v3 = vmax.f32 %v825_v4, 0.0  ;;  %v828_v5 = vpop.f32.mrb[48].mxu0 }
 0x34a   :  { %v829_v11 = vadd.f32 %v828_v5, %v1965_v1  ;;  %v830_v7 = vpop.f32.mrb[49].mxu0  ;;  %v2006_v5 = vld [vmem:[%s2107_s3 + $0x5] ss:$0 sm:$0xff] }
 0x34b   :  { %v831_v8 = vadd.f32 %v830_v7, %v1969_v36  ;;  %1047 = vmatprep.mubr.f32.mxu1 %v898_v3 }
 0x34c   :  { %1048 = vmatmul.mubr.f32.gmra.mrb[38].mxu1 %v897_v6  ;;  %v899_v12 = vmax.f32 %v829_v11, 0.0 }
 0x34d   :  { %v900_v10 = vmax.f32 %v831_v8, 0.0  ;;  %v834_v18 = vpop.f32.mrb[50].mxu0  ;;  %v1120_v8 = vpop.permute.xlu0 %1119 }
 0x34e   :  { %v835_v13 = vadd.f32 %v834_v18, %v1965_v1  ;;  %v836_v14 = vpop.f32.mrb[51].mxu0 }
 0x34f   :  { %v837_v26 = vadd.f32 %v836_v14, %v1969_v36  ;;  %1052 = vmatprep.mubr.f32.mxu1 %v900_v10 }
 0x350   :  { %1053 = vmatmul.mubr.f32.gmra.mrb[40].mxu1 %v899_v12  ;;  %v901_v31 = vmax.f32 %v835_v13, 0.0 }
 0x351   :  { %v902_v32 = vmax.f32 %v837_v26, 0.0  ;;  %v840_v15 = vpop.f32.mrb[52].mxu0  ;;  %v1122_v26 = vpop.permute.xlu1 %1121 }
 0x352   :  { %v841_v40 = vadd.f32 %v840_v15, %v1965_v1  ;;  %v842_v17 = vpop.f32.mrb[53].mxu0 }
 0x353   :  { %v843_v19 = vadd.f32 %v842_v17, %v1969_v36  ;;  %1057 = vmatprep.mubr.f32.mxu1 %v902_v32 }
 0x354   :  { %1058 = vmatmul.mubr.f32.gmra.mrb[42].mxu1 %v901_v31  ;;  %v903_v21 = vmax.f32 %v841_v40, 0.0 }
 0x355   :  { %v904_v20 = vmax.f32 %v843_v19, 0.0  ;;  %v846_v48 = vpop.f32.mrb[54].mxu0 }
 0x356   :  { %v847_v23 = vadd.f32 %v846_v48, %v1965_v1  ;;  %v848_v24 = vpop.f32.mrb[55].mxu0 }
 0x357   :  { %v849_v56 = vadd.f32 %v848_v24, %v1969_v36  ;;  %1062 = vmatprep.mubr.f32.mxu1 %v904_v20  ;;  %v1124_v20 = vpop.permute.xlu0 %1123 }
 0x358   :  { %1063 = vmatmul.mubr.f32.gmra.mrb[44].mxu1 %v903_v21  ;;  %v905_v34 = vmax.f32 %v847_v23, 0.0 }
 0x359   :  { %v906_v25 = vmax.f32 %v849_v56, 0.0  ;;  %v852_v29 = vpop.f32.mrb[56].mxu0 }
 0x35a   :  { %v853_v35 = vadd.f32 %v852_v29, %v1965_v1  ;;  %v854_v0 = vpop.f32.mrb[57].mxu0  ;;  %v1126_v29 = vpop.permute.xlu1 %1125 }
 0x35b   :  { %v855_v9 = vadd.f32 %v854_v0, %v1969_v36  ;;  %1067 = vmatprep.mubr.f32.mxu1 %v906_v25 }
 0x35c   :  { %1068 = vmatmul.mubr.f32.gmra.mrb[46].mxu1 %v905_v34  ;;  %v907_v38 = vmax.f32 %v853_v35, 0.0 }
 0x35d   :  { %v908_v16 = vmax.f32 %v855_v9, 0.0  ;;  %v858_v37 = vpop.f32.mrb[58].mxu0 }
 0x35e   :  { %v859_v41 = vadd.f32 %v858_v37, %v1965_v1  ;;  %v860_v22 = vpop.f32.mrb[59].mxu0 }
 0x35f   :  { %v861_v42 = vadd.f32 %v860_v22, %v1969_v36  ;;  %1072 = vmatprep.mubr.f32.mxu1 %v908_v16 }
 0x360   :  { %1073 = vmatmul.mubr.f32.gmra.mrb[48].mxu1 %v907_v38  ;;  %v909_v28 = vmax.f32 %v859_v41, 0.0  ;;  %v1128_v38 = vpop.permute.xlu0 %1127 }
 0x361   :  { %v910_v43 = vmax.f32 %v861_v42, 0.0  ;;  %v864_v44 = vpop.f32.mrb[60].mxu0 }
 0x362   :  { %v865_v27 = vadd.f32 %v864_v44, %v1965_v1  ;;  %v866_v30 = vpop.f32.mrb[61].mxu0 }
 0x363   :  { %v867_v33 = vadd.f32 %v866_v30, %v1969_v36  ;;  %1077 = vmatprep.mubr.f32.mxu1 %v910_v43 }
 0x364   :  { %1078 = vmatmul.mubr.f32.gmra.mrb[50].mxu1 %v909_v28  ;;  %v911_v49 = vmax.f32 %v865_v27, 0.0  ;;  %v1130_v27 = vpop.permute.xlu1 %1129 }
 0x365   :  { %v912_v45 = vmax.f32 %v867_v33, 0.0  ;;  %v870_v47 = vpop.f32.mrb[62].mxu0 }
 0x366   :  { %v871_v39 = vadd.f32 %v870_v47, %v1965_v1  ;;  %v872_v50 = vpop.f32.mrb[63].mxu0 }
 0x367   :  { %v873_v51 = vadd.f32 %v872_v50, %v1969_v36  ;;  %1082 = vmatprep.mubr.f32.mxu1 %v912_v45  ;;  %v1132_v50 = vpop.permute.xlu0 %1131 }
 0x368   :  { %1083 = vmatmul.mubr.f32.gmra.mrb[52].mxu1 %v911_v49  ;;  %v913_v54 = vmax.f32 %v871_v39, 0.0 }
 0x369   :  { %v914_v52 = vmax.f32 %v873_v51, 0.0  ;;  %v876_v46 = vpop.f32.mrb[64].mxu0 }
 0x36a   :  { %v877_v55 = vadd.f32 %v876_v46, %v1965_v1  ;;  %v878_v57 = vpop.f32.mrb[65].mxu0 }
 0x36b   :  { %v879_v53 = vadd.f32 %v878_v57, %v1969_v36  ;;  %1087 = vmatprep.mubr.f32.mxu1 %v914_v52 }
 0x36c   :  { %1088 = vmatmul.mubr.f32.gmra.mrb[54].mxu1 %v913_v54  ;;  %v915_v61 = vmax.f32 %v877_v55, 0.0 }
 0x36d   :  { %v916_v58 = vmax.f32 %v879_v53, 0.0  ;;  %v882_v59 = vpop.f32.mrb[66].mxu0  ;;  %v1134_v53 = vpop.permute.xlu1 %1133 }
 0x36e   :  { %v883_v60 = vadd.f32 %v882_v59, %v1965_v1  ;;  %v884_v62 = vpop.f32.mrb[67].mxu0 }
 0x36f   :  { %v885_v63 = vadd.f32 %v884_v62, %v1969_v36  ;;  %1092 = vmatprep.mubr.f32.mxu1 %v916_v58 }
 0x370   :  { %1093 = vmatmul.mubr.f32.gmra.mrb[56].mxu1 %v915_v61  ;;  %v917_v4 = vmax.f32 %v883_v60, 0.0 }
 0x371   :  { %v918_v2 = vmax.f32 %v885_v63, 0.0 }
 0x373   :  { %1097 = vmatprep.mubr.f32.mxu1 %v918_v2  ;;  %v1136_v2 = vpop.permute.xlu0 %1135 }
 0x374   :  { %1098 = vmatmul.mubr.f32.gmra.mrb[58].mxu1 %v917_v4 }
 0x40b   :  { %v1367_v3 = vpop.f32.mrb[28].mxu1 }
 0x40c   :  { %v1368_v6 = vpop.f32.mrb[29].mxu1 }
 0x40d   :  { %v1369_v11 = vadd.f32 %v1368_v6, %v1367_v3 }
 0x40f   :  { %v1025_v7 = vadd.f32 %v1369_v11, %v2006_v5  ;;  %v1370_v1 = vpop.f32.mrb[30].mxu1 }
 0x410   :  { %v1371_v36 = vpop.f32.mrb[31].mxu1 }
 0x411   :  { %v1167_v10 = vsel %vm91_vm0, %v1025_v7, %v1120_v8  ;;  %v1372_v18 = vadd.f32 %v1371_v36, %v1370_v1  ;;  %v1138_v8 = vpop.permute.xlu1 %1137 }
 0x412   :  { %v1184_v12 = vsel %vm1183_vm2, %v1167_v10, 0.0 }
 0x413   :  { %1200 = vst [vmem:[%s2108_s4] sm:$0xff] %v1184_v12  ;;  %v1030_v13 = vadd.f32 %v1372_v18, %v2006_v5  ;;  %v1373_v14 = vpop.f32.mrb[32].mxu1 }
 0x414   :  { %v1374_v32 = vpop.f32.mrb[33].mxu1 }
 0x415   :  { %v1168_v15 = vsel %vm91_vm0, %v1030_v13, %v1122_v26  ;;  %v1375_v31 = vadd.f32 %v1374_v32, %v1373_v14  ;;  %v1140_v26 = vpop.permute.xlu0 %1139 }
 0x416   :  { %v1185_v40 = vsel %vm1183_vm2, %v1168_v15, 0.0 }
 0x417   :  { %1201 = vst [vmem:[%s2108_s4 + $0x8] sm:$0xff] %v1185_v40  ;;  %v1035_v17 = vadd.f32 %v1375_v31, %v2006_v5  ;;  %v1376_v19 = vpop.f32.mrb[34].mxu1 }
 0x418   :  { %v1377_v48 = vpop.f32.mrb[35].mxu1 }
 0x419   :  { %v1169_v21 = vsel %vm91_vm0, %v1035_v17, %v1124_v20  ;;  %v1378_v23 = vadd.f32 %v1377_v48, %v1376_v19  ;;  %v1142_v20 = vpop.permute.xlu1 %1141 }
 0x41a   :  { %v1186_v24 = vsel %vm1183_vm2, %v1169_v21, 0.0 }
 0x41b   :  { %1202 = vst [vmem:[%s2108_s4 + $0x10] sm:$0xff] %v1186_v24  ;;  %v1040_v56 = vadd.f32 %v1378_v23, %v2006_v5  ;;  %v1379_v25 = vpop.f32.mrb[36].mxu1 }
 0x41c   :  { %v1380_v34 = vpop.f32.mrb[37].mxu1 }
 0x41d   :  { %v1170_v35 = vsel %vm91_vm0, %v1040_v56, %v1126_v29  ;;  %v1381_v0 = vadd.f32 %v1380_v34, %v1379_v25  ;;  %v1144_v29 = vpop.permute.xlu0 %1143 }
 0x41e   :  { %v1187_v9 = vsel %vm1183_vm2, %v1170_v35, 0.0 }
 0x41f   :  { %1203 = vst [vmem:[%s2108_s4 + $0x18] sm:$0xff] %v1187_v9  ;;  %v1045_v16 = vadd.f32 %v1381_v0, %v2006_v5  ;;  %v1382_v37 = vpop.f32.mrb[38].mxu1 }
 0x420   :  { %v1383_v41 = vpop.f32.mrb[39].mxu1 }
 0x421   :  { %v1171_v22 = vsel %vm91_vm0, %v1045_v16, %v1128_v38  ;;  %v1384_v42 = vadd.f32 %v1383_v41, %v1382_v37  ;;  %v1146_v38 = vpop.permute.xlu1 %1145 }
 0x422   :  { %v1188_v43 = vsel %vm1183_vm2, %v1171_v22, 0.0 }
 0x423   :  { %1204 = vst [vmem:[%s2108_s4 + $0x20] sm:$0xff] %v1188_v43  ;;  %v1050_v44 = vadd.f32 %v1384_v42, %v2006_v5  ;;  %v1385_v28 = vpop.f32.mrb[40].mxu1 }
 0x424   :  { %v1386_v30 = vpop.f32.mrb[41].mxu1 }
 0x425   :  { %v1172_v33 = vsel %vm91_vm0, %v1050_v44, %v1130_v27  ;;  %v1387_v45 = vadd.f32 %v1386_v30, %v1385_v28  ;;  %v1148_v27 = vpop.permute.xlu0 %1147 }
 0x426   :  { %v1189_v47 = vsel %vm1183_vm2, %v1172_v33, 0.0 }
 0x427   :  { %1205 = vst [vmem:[%s2108_s4 + $0x28] sm:$0xff] %v1189_v47  ;;  %v1055_v49 = vadd.f32 %v1387_v45, %v2006_v5  ;;  %v1388_v39 = vpop.f32.mrb[42].mxu1 }
 0x428   :  { %v1389_v51 = vpop.f32.mrb[43].mxu1 }
 0x429   :  { %v1173_v52 = vsel %vm91_vm0, %v1055_v49, %v1132_v50  ;;  %v1390_v46 = vadd.f32 %v1389_v51, %v1388_v39  ;;  %v1150_v39 = vpop.permute.xlu1 %1149 }
 0x42a   :  { %v1190_v54 = vsel %vm1183_vm2, %v1173_v52, 0.0 }
 0x42b   :  { %1206 = vst [vmem:[%s2108_s4 + $0x30] sm:$0xff] %v1190_v54  ;;  %v1060_v55 = vadd.f32 %v1390_v46, %v2006_v5  ;;  %v1391_v57 = vpop.f32.mrb[44].mxu1 }
 0x42c   :  { %v1392_v58 = vpop.f32.mrb[45].mxu1 }
 0x42d   :  { %v1174_v59 = vsel %vm91_vm0, %v1060_v55, %v1134_v53  ;;  %v1393_v61 = vadd.f32 %v1392_v58, %v1391_v57 }
 0x42e   :  { %v1191_v60 = vsel %vm1183_vm2, %v1174_v59, 0.0 }
 0x42f   :  { %1207 = vst [vmem:[%s2108_s4 + $0x38] sm:$0xff] %v1191_v60  ;;  %v1065_v62 = vadd.f32 %v1393_v61, %v2006_v5  ;;  %v1394_v63 = vpop.f32.mrb[46].mxu1 }
 0x430   :  { %v1395_v4 = vpop.f32.mrb[47].mxu1 }
 0x431   :  { %v1175_v3 = vsel %vm91_vm0, %v1065_v62, %v1136_v2  ;;  %v1396_v6 = vadd.f32 %v1395_v4, %v1394_v63 }
 0x432   :  { %v1192_v11 = vsel %vm1183_vm2, %v1175_v3, 0.0 }
 0x433   :  { %1208 = vst [vmem:[%s2108_s4 + $0x40] sm:$0xff] %v1192_v11  ;;  %v1070_v7 = vadd.f32 %v1396_v6, %v2006_v5  ;;  %v1397_v1 = vpop.f32.mrb[48].mxu1 }
 0x434   :  { %v1398_v36 = vpop.f32.mrb[49].mxu1 }
 0x435   :  { %v1176_v10 = vsel %vm91_vm0, %v1070_v7, %v1138_v8  ;;  %v1399_v18 = vadd.f32 %v1398_v36, %v1397_v1 }
 0x436   :  { %v1193_v12 = vsel %vm1183_vm2, %v1176_v10, 0.0 }
 0x437   :  { %1209 = vst [vmem:[%s2108_s4 + $0x48] sm:$0xff] %v1193_v12  ;;  %v1075_v13 = vadd.f32 %v1399_v18, %v2006_v5  ;;  %v1400_v14 = vpop.f32.mrb[50].mxu1 }
 0x438   :  { %v1401_v32 = vpop.f32.mrb[51].mxu1 }
 0x439   :  { %v1177_v15 = vsel %vm91_vm0, %v1075_v13, %v1140_v26  ;;  %v1402_v31 = vadd.f32 %v1401_v32, %v1400_v14 }
 0x43a   :  { %v1194_v40 = vsel %vm1183_vm2, %v1177_v15, 0.0 }
 0x43b   :  { %1210 = vst [vmem:[%s2108_s4 + $0x50] sm:$0xff] %v1194_v40  ;;  %v1080_v17 = vadd.f32 %v1402_v31, %v2006_v5  ;;  %v1403_v19 = vpop.f32.mrb[52].mxu1 }
 0x43c   :  { %v1404_v48 = vpop.f32.mrb[53].mxu1 }
 0x43d   :  { %v1178_v21 = vsel %vm91_vm0, %v1080_v17, %v1142_v20  ;;  %v1405_v23 = vadd.f32 %v1404_v48, %v1403_v19 }
 0x43e   :  { %v1195_v24 = vsel %vm1183_vm2, %v1178_v21, 0.0 }
 0x43f   :  { %1211 = vst [vmem:[%s2108_s4 + $0x58] sm:$0xff] %v1195_v24  ;;  %v1085_v56 = vadd.f32 %v1405_v23, %v2006_v5  ;;  %v1406_v25 = vpop.f32.mrb[54].mxu1 }
 0x440   :  { %v1407_v34 = vpop.f32.mrb[55].mxu1 }
 0x441   :  { %v1179_v35 = vsel %vm91_vm0, %v1085_v56, %v1144_v29  ;;  %v1408_v0 = vadd.f32 %v1407_v34, %v1406_v25 }
 0x442   :  { %v1196_v9 = vsel %vm1183_vm2, %v1179_v35, 0.0 }
 0x443   :  { %1212 = vst [vmem:[%s2108_s4 + $0x60] sm:$0xff] %v1196_v9  ;;  %v1090_v16 = vadd.f32 %v1408_v0, %v2006_v5  ;;  %v1409_v37 = vpop.f32.mrb[56].mxu1 }
 0x444   :  { %v1410_v41 = vpop.f32.mrb[57].mxu1 }
 0x445   :  { %v1180_v22 = vsel %vm91_vm0, %v1090_v16, %v1146_v38  ;;  %v1411_v42 = vadd.f32 %v1410_v41, %v1409_v37 }
 0x446   :  { %v1197_v43 = vsel %vm1183_vm2, %v1180_v22, 0.0 }
 0x447   :  { %1213 = vst [vmem:[%s2108_s4 + $0x68] sm:$0xff] %v1197_v43  ;;  %v1095_v44 = vadd.f32 %v1411_v42, %v2006_v5  ;;  %v1412_v28 = vpop.f32.mrb[58].mxu1 }
 0x448   :  { %v1413_v30 = vpop.f32.mrb[59].mxu1 }
 0x449   :  { %v1181_v33 = vsel %vm91_vm0, %v1095_v44, %v1148_v27  ;;  %v1414_v45 = vadd.f32 %v1413_v30, %v1412_v28 }
 0x44a   :  { %v1198_v47 = vsel %vm1183_vm2, %v1181_v33, 0.0 }
 0x44b   :  { %1214 = vst [vmem:[%s2108_s4 + $0x70] sm:$0xff] %v1198_v47  ;;  %v1100_v49 = vadd.f32 %v1414_v45, %v2006_v5 }
 0x44d   :  { %v1182_v50 = vsel %vm91_vm0, %v1100_v49, %v1150_v39 }
 0x44e   :  { %v1199_v51 = vsel %vm1183_vm2, %v1182_v50, 0.0 }
 0x44f   :  { %1215 = vst [vmem:[%s2108_s4 + $0x78] sm:$0xff] %v1199_v51 }
 0x450   :  { %1220 = vsyncpa [#allocation3], 1 }

</bundles_post_ra>
